<compile_context>
chip_gen: v5e
topology: v5e:2x2
jax: 0.10.0
libtpu: 0.0.40
codegen_flags: <defaults>
</compile_context>

<pallas_src>
import functools

import jax
import jax.numpy as jnp
from jax import lax
from jax.experimental import pallas as pl
from jax.experimental.pallas import tpu as pltpu


# ----------------------------------------------------------------------------
# Fused kernel.  grid = (batch, heads); heads is a reduction axis.
# Per-head row layout of the packed projection weight / scratch (PH rows):
#   [0,  D)            : Wq_h^T   (scale folded in)
#   [D,  2D)           : Wk_h^T
#   [2D, 2D+VROWS)     : [ Wv_h^T ; one-hot(bias row) ; zero rows ]
# ----------------------------------------------------------------------------
def _conv_attention_kernel(x_ref, wqkvt_ref, wp_ref, bp_ref, o_ref, qkv_ref,
                           *, C, C_pad, H, W, D, VROWS, PH, KP, num_heads):
    N = H * W
    h = pl.program_id(1)

    # ---- head 0: build X_col^T once, run the fused QKV projection ----------
    @pl.when(h == 0)
    def _():
        x = x_ref[0]                                          # (C, N) f32
        if C_pad > C:
            x = jnp.concatenate(
                [x, jnp.zeros((C_pad - C, N), jnp.float32)], axis=0)  # (C_pad, N)

        n_idx = lax.broadcasted_iota(jnp.int32, (C_pad, N), 1)
        if (W & (W - 1)) == 0:                                # power-of-two width
            col = jnp.bitwise_and(n_idx, W - 1)
        else:
            col = jnp.remainder(n_idx, W)
        ok_l = col >= 1
        ok_r = col <= W - 2
        ok_t = n_idx >= W
        ok_b = n_idx < (H - 1) * W

        blocks = []
        for dy in (-1, 0, 1):
            for dx in (-1, 0, 1):
                off = dy * W + dx
                # tap[c, n] = x[c, n + off] for valid neighbors, else 0
                tap = x if off == 0 else pltpu.roll(x, (-off) % N, axis=1)
                mask = None
                if dy == -1:
                    mask = ok_t
                elif dy == 1:
                    mask = ok_b
                if dx == -1:
                    mask = ok_l if mask is None else jnp.logical_and(mask, ok_l)
                elif dx == 1:
                    mask = ok_r if mask is None else jnp.logical_and(mask, ok_r)
                if mask is not None:
                    tap = jnp.where(mask, tap, 0.0)
                blocks.append(tap)                            # (C_pad, N)
        blocks.append(jnp.ones((1, N), jnp.float32))          # BN-bias / ones row
        if KP > 9 * C_pad + 1:
            blocks.append(jnp.zeros((KP - 9 * C_pad - 1, N), jnp.float32))
        xcol_t = jnp.concatenate(blocks, axis=0).astype(jnp.bfloat16)  # (KP, N)

        # one wide MXU pass for q/k/v of all heads (lane-dense N output)
        proj = jnp.dot(wqkvt_ref[...], xcol_t,
                       preferred_element_type=jnp.float32).astype(jnp.bfloat16)
        for hh in range(num_heads):                           # static store unroll
            qkv_ref[hh] = proj[hh * PH:(hh + 1) * PH]

    # ---- per-head attention (one head per grid step) ------------------------
    blk = qkv_ref[h]                                          # (PH, N) bf16
    qt = blk[0:D]                                             # (D, N)
    kt = blk[D:2 * D]                                         # (D, N)
    vt = blk[2 * D:2 * D + VROWS]                             # (VROWS, N): [v^T; 1s; 0s]

    # scores transposed: st[j, i] = q_i . k_j   (scale folded into Wq)
    st = lax.dot_general(kt, qt, (((0,), (0,)), ((), ())),
                         preferred_element_type=jnp.float32)  # (N, N) f32
    m = jnp.max(st, axis=0, keepdims=True)                    # (1, N)
    p_t = jnp.exp(st - m)                                     # unnormalized p^T, f32
    pvt = jnp.dot(vt, p_t.astype(jnp.bfloat16),
                  preferred_element_type=jnp.float32)         # (VROWS, N)
    denom = pvt[D:D + 1, :]                                   # row D = sum_j p[i, j]
    oht = pvt[0:D, :] * pl.reciprocal(denom, approx=True)     # (D, N) = softmax@v ^T

    # fold this head's slice of the output projection (trans_a, lane-dense out)
    contrib = lax.dot_general(oht.astype(jnp.bfloat16), wp_ref[0],
                              (((0,), (0,)), ((), ())),
                              preferred_element_type=jnp.float32)  # (N, OUTP)

    @pl.when(h == 0)
    def _():
        o_ref[0] = contrib + bp_ref[...]

    @pl.when(h != 0)
    def _():
        o_ref[0] = o_ref[0] + contrib


# ----------------------------------------------------------------------------
# Wrapper: fold conv/BN/linear into effective packed weights, launch kernel.
# ----------------------------------------------------------------------------
def conv_attention_forward(x, params, *, num_heads, dim_head):
    B, C, H, W = x.shape
    N = H * W
    D = dim_head
    HD = num_heads * D
    out_ch = params['proj_w'].shape[1]

    C_pad = max(8, ((C + 7) // 8) * 8)                 # 8-aligned per-tap channel block
    KP = ((9 * C_pad + 1 + 7) // 8) * 8                # im2col rows (+ bias row)
    VROWS = ((D + 1 + 15) // 16) * 16                  # v block rows (bf16-tile aligned)
    PH = 2 * D + VROWS                                 # packed rows per head
    ROWS = num_heads * PH
    OUTP = max(128, ((out_ch + 127) // 128) * 128)     # lane-dense output width
    scale = float(D) ** -0.5

    def fold(p, extra_scale):
        # W_eff[t*C_pad + c, :] = dw_w[c, t] * bn_scale[c] * lin_w[c, :]
        tapw = (p['dw_w'] * p['bn_scale'][:, None, None]).reshape(C, 9)        # (C, 9)
        w_tc = tapw.T[:, :, None] * p['lin_w'][None, :, :]                      # (9, C, HD)
        w_tc = jnp.pad(w_tc, ((0, 0), (0, C_pad - C), (0, 0)))                  # (9, C_pad, HD)
        w_taps = w_tc.reshape(9 * C_pad, HD)
        b_row = (p['bn_bias'] @ p['lin_w'])[None, :]                            # (1, HD)
        pad = jnp.zeros((KP - 9 * C_pad - 1, HD), jnp.float32)
        return jnp.concatenate([w_taps, b_row, pad], axis=0) * extra_scale      # (KP, HD)

    wq = fold(params['q'], scale)                      # attention scale folded into q
    wk = fold(params['k'], 1.0)
    wv = fold(params['v'], 1.0)
    onehot = jnp.zeros((1, KP), jnp.float32).at[0, 9 * C_pad].set(1.0)  # selects ones row

    head_blocks = []
    for hh in range(num_heads):
        sl = slice(hh * D, (hh + 1) * D)
        head_blocks.append(jnp.concatenate(
            [wq[:, sl].T, wk[:, sl].T, wv[:, sl].T, onehot,
             jnp.zeros((VROWS - D - 1, KP), jnp.float32)], axis=0))             # (PH, KP)
    w_qkvt = jnp.concatenate(head_blocks, axis=0).astype(jnp.bfloat16)          # (ROWS, KP)

    wp_h = jnp.pad(params['proj_w'], ((0, 0), (0, OUTP - out_ch))
                   ).reshape(num_heads, D, OUTP).astype(jnp.bfloat16)           # (heads, D, OUTP)
    bp_pad = jnp.pad(params['proj_b'], (0, OUTP - out_ch)).reshape(1, OUTP)

    x_flat = x.reshape(B, C, N)                        # pure reshape, lane-dense on N

    kern = functools.partial(_conv_attention_kernel, C=C, C_pad=C_pad, H=H, W=W,
                             D=D, VROWS=VROWS, PH=PH, KP=KP, num_heads=num_heads)
    out_pad = pl.pallas_call(
        kern,
        out_shape=jax.ShapeDtypeStruct((B, N, OUTP), jnp.float32),
        grid=(B, num_heads),
        in_specs=[
            pl.BlockSpec((1, C, N), lambda b, h: (b, 0, 0)),          # x (f32)
            pl.BlockSpec((ROWS, KP), lambda b, h: (0, 0)),            # packed QKV^T (bf16)
            pl.BlockSpec((1, D, OUTP), lambda b, h: (h, 0, 0)),       # per-head out-proj (bf16)
            pl.BlockSpec((1, OUTP), lambda b, h: (0, 0)),             # out-proj bias (f32)
        ],
        out_specs=pl.BlockSpec((1, N, OUTP), lambda b, h: (b, 0, 0)),
        scratch_shapes=[pltpu.VMEM((num_heads, PH, N), jnp.bfloat16)],
        compiler_params=pltpu.CompilerParams(
            dimension_semantics=("parallel", "arbitrary"),
            vmem_limit_bytes=32 * 1024 * 1024),
    )(x_flat, w_qkvt, wp_h, bp_pad)
    return out_pad[:, :, :out_ch]                      # drop lane padding


# ----------------------------------------------------------------------------
# Pure-JAX reference (correctness check only)
# ----------------------------------------------------------------------------
def reference_forward(x, params, *, num_heads, dim_head):
    C = x.shape[1]

    def branch(p):
        w = p['dw_w'].reshape(C, 1, 3, 3)
        y = lax.conv_general_dilated(x, w, (1, 1), ((1, 1), (1, 1)),
                                     feature_group_count=C,
                                     dimension_numbers=('NCHW', 'OIHW', 'NCHW'))
        y = y * p['bn_scale'][None, :, None, None] + p['bn_bias'][None, :, None, None]
        B, _, H, W = y.shape
        t = y.transpose(0, 2, 3, 1).reshape(B, H * W, C)
        return t @ p['lin_w']

    q, k, v = branch(params['q']), branch(params['k']), branch(params['v'])

    def heads(t):
        B, N, _ = t.shape
        return t.reshape(B, N, num_heads, dim_head).transpose(0, 2, 1, 3)

    qh, kh, vh = heads(q), heads(k), heads(v)
    s = jnp.einsum('bhid,bhjd->bhij', qh, kh) * (float(dim_head) ** -0.5)
    a = jax.nn.softmax(s, axis=-1)
    o = jnp.einsum('bhij,bhjd->bhid', a, vh)
    B, Hh, N, D = o.shape
    o = o.transpose(0, 2, 1, 3).reshape(B, N, Hh * D)
    return o @ params['proj_w'] + params['proj_b']


def init_params(key, in_channels, out_channels, num_heads, dim_head):
    inner = num_heads * dim_head
    ks = jax.random.split(key, 8)
    # fresh BatchNorm2d (eval): gamma=1, beta=0, running_mean=0, running_var=1, eps=1e-5
    bn_scale = jnp.full((in_channels,), 1.0 / float(jnp.sqrt(1.0 + 1e-5)), jnp.float32)
    bn_bias = jnp.zeros((in_channels,), jnp.float32)

    def branch(k_conv, k_lin):
        return dict(
            dw_w=jax.random.normal(k_conv, (in_channels, 3, 3), jnp.float32) * 0.1,
            bn_scale=bn_scale,
            bn_bias=bn_bias,
            lin_w=jax.random.normal(k_lin, (in_channels, inner), jnp.float32) * 0.1,
        )

    return dict(
        q=branch(ks[0], ks[1]),
        k=branch(ks[2], ks[3]),
        v=branch(ks[4], ks[5]),
        proj_w=jax.random.normal(ks[6], (inner, out_channels), jnp.float32) * 0.1,
        proj_b=jax.random.normal(ks[7], (out_channels,), jnp.float32) * 0.1,
    )


if __name__ == "__main__":
    # Module config: in_channels=4, out_channels=8, num_heads=2, dim_per_head=32,
    # qkv_bias=False, kernel_size=3, stride_q=stride_kv=1, padding=1, method='conv',
    # attn_drop=output_drop=0.0 (identity at inference).
    B, C_in, H, W = 2, 4, 16, 16
    num_heads, dim_head, C_out = 2, 32, 8

    key = jax.random.PRNGKey(0)
    k_x, k_p = jax.random.split(key)
    x = jax.random.normal(k_x, (B, C_in, H, W), jnp.float32)
    params = init_params(k_p, C_in, C_out, num_heads, dim_head)

    fwd = jax.jit(lambda xx, pp: conv_attention_forward(
        xx, pp, num_heads=num_heads, dim_head=dim_head))
    out = fwd(x, params)
    out = jax.block_until_ready(out)

    ref = reference_forward(x, params, num_heads=num_heads, dim_head=dim_head)
    assert out.shape == (B, H * W, C_out), out.shape
    err = float(jnp.max(jnp.abs(out - ref)))
    assert jnp.allclose(out, ref, rtol=2e-3, atol=2e-3), err

    print("KERNEL_OK")
</pallas_src>

<mosaic_0001>
module attributes {stable_mosaic.version = 11 : i64} {
  func.func @_conv_attention_kernel(%arg0: i32, %arg1: i32, %arg2: memref<1x4x256xf32, #tpu.memory_space<vmem>>, %arg3: memref<224x80xbf16, #tpu.memory_space<vmem>>, %arg4: memref<1x32x128xbf16, #tpu.memory_space<vmem>>, %arg5: memref<1x128xf32, #tpu.memory_space<vmem>>, %arg6: memref<1x256x128xf32, #tpu.memory_space<vmem>>, %arg7: memref<2x112x256xbf16, #tpu.memory_space<vmem>>) attributes {dimension_semantics = [#tpu.dimension_semantics<parallel>, #tpu.dimension_semantics<arbitrary>], iteration_bounds = array<i64: 2, 2>, scalar_prefetch = 0 : i64, scratch_operands = 1 : i64, tpu.core_type = #tpu.core_type<tc>, window_params = [{transform_indices = @transform_0, window_bounds = array<i64: 1, 4, 256>}, {pipeline_mode = #tpu.pipeline_mode<synchronous>, transform_indices = @transform_1, window_bounds = array<i64: 224, 80>}, {transform_indices = @transform_2, window_bounds = array<i64: 1, 32, 128>}, {pipeline_mode = #tpu.pipeline_mode<synchronous>, transform_indices = @transform_3, window_bounds = array<i64: 1, 128>}, {transform_indices = @transform_4, window_bounds = array<i64: 1, 256, 128>}]} {
    %c0_i32 = arith.constant 0 : i32
    %0 = arith.cmpi eq, %arg1, %c0_i32 : i32
    %1 = arith.extui %0 : i1 to i32
    %c0_i32_0 = arith.constant 0 : i32
    %2 = arith.cmpi ne, %1, %c0_i32_0 : i32
    scf.if %2 {
      %c0_12 = arith.constant 0 : index
      %c0_13 = arith.constant 0 : index
      %c0_14 = arith.constant 0 : index
      %32 = vector.load %arg2[%c0_12, %c0_13, %c0_14] : memref<1x4x256xf32, #tpu.memory_space<vmem>>, vector<1x4x256xf32>
      %33 = vector.shape_cast %32 : vector<1x4x256xf32> to vector<4x256xf32>
      %cst_15 = arith.constant 0.000000e+00 : f32
      %34 = vector.broadcast %cst_15 : f32 to vector<4x256xf32>
      %35 = tpu.concatenate %33, %34 in 0 : vector<4x256xf32>, vector<4x256xf32> -> vector<8x256xf32>
      %36 = tpu.iota {dimensions = array<i32: 1>} : vector<8x256xi32>
      %c15_i32 = arith.constant 15 : i32
      %37 = vector.broadcast %c15_i32 : i32 to vector<8x256xi32>
      %38 = arith.andi %36, %37 : vector<8x256xi32>
      %c1_i32 = arith.constant 1 : i32
      %39 = vector.broadcast %c1_i32 : i32 to vector<8x256xi32>
      %40 = arith.cmpi sge, %38, %39 : vector<8x256xi32>
      %c14_i32 = arith.constant 14 : i32
      %41 = vector.broadcast %c14_i32 : i32 to vector<8x256xi32>
      %42 = arith.cmpi sle, %38, %41 : vector<8x256xi32>
      %c16_i32 = arith.constant 16 : i32
      %43 = vector.broadcast %c16_i32 : i32 to vector<8x256xi32>
      %44 = arith.cmpi sge, %36, %43 : vector<8x256xi32>
      %c240_i32 = arith.constant 240 : i32
      %45 = vector.broadcast %c240_i32 : i32 to vector<8x256xi32>
      %46 = arith.cmpi slt, %36, %45 : vector<8x256xi32>
      %c17_i32 = arith.constant 17 : i32
      %47 = tpu.dynamic_rotate %35 by %c17_i32 dim 1 : vector<8x256xf32>, i32 -> vector<8x256xf32>
      %48 = arith.andi %44, %40 : vector<8x256xi1>
      %cst_16 = arith.constant 0.000000e+00 : f32
      %49 = vector.broadcast %cst_16 : f32 to vector<8x256xf32>
      %50 = arith.select %48, %47, %49 : vector<8x256xi1>, vector<8x256xf32>
      %c16_i32_17 = arith.constant 16 : i32
      %51 = tpu.dynamic_rotate %35 by %c16_i32_17 dim 1 : vector<8x256xf32>, i32 -> vector<8x256xf32>
      %cst_18 = arith.constant 0.000000e+00 : f32
      %52 = vector.broadcast %cst_18 : f32 to vector<8x256xf32>
      %53 = arith.select %44, %51, %52 : vector<8x256xi1>, vector<8x256xf32>
      %c15_i32_19 = arith.constant 15 : i32
      %54 = tpu.dynamic_rotate %35 by %c15_i32_19 dim 1 : vector<8x256xf32>, i32 -> vector<8x256xf32>
      %55 = arith.andi %44, %42 : vector<8x256xi1>
      %cst_20 = arith.constant 0.000000e+00 : f32
      %56 = vector.broadcast %cst_20 : f32 to vector<8x256xf32>
      %57 = arith.select %55, %54, %56 : vector<8x256xi1>, vector<8x256xf32>
      %c1_i32_21 = arith.constant 1 : i32
      %58 = tpu.dynamic_rotate %35 by %c1_i32_21 dim 1 : vector<8x256xf32>, i32 -> vector<8x256xf32>
      %cst_22 = arith.constant 0.000000e+00 : f32
      %59 = vector.broadcast %cst_22 : f32 to vector<8x256xf32>
      %60 = arith.select %40, %58, %59 : vector<8x256xi1>, vector<8x256xf32>
      %c255_i32 = arith.constant 255 : i32
      %61 = tpu.dynamic_rotate %35 by %c255_i32 dim 1 : vector<8x256xf32>, i32 -> vector<8x256xf32>
      %cst_23 = arith.constant 0.000000e+00 : f32
      %62 = vector.broadcast %cst_23 : f32 to vector<8x256xf32>
      %63 = arith.select %42, %61, %62 : vector<8x256xi1>, vector<8x256xf32>
      %c241_i32 = arith.constant 241 : i32
      %64 = tpu.dynamic_rotate %35 by %c241_i32 dim 1 : vector<8x256xf32>, i32 -> vector<8x256xf32>
      %65 = arith.andi %46, %40 : vector<8x256xi1>
      %cst_24 = arith.constant 0.000000e+00 : f32
      %66 = vector.broadcast %cst_24 : f32 to vector<8x256xf32>
      %67 = arith.select %65, %64, %66 : vector<8x256xi1>, vector<8x256xf32>
      %c240_i32_25 = arith.constant 240 : i32
      %68 = tpu.dynamic_rotate %35 by %c240_i32_25 dim 1 : vector<8x256xf32>, i32 -> vector<8x256xf32>
      %cst_26 = arith.constant 0.000000e+00 : f32
      %69 = vector.broadcast %cst_26 : f32 to vector<8x256xf32>
      %70 = arith.select %46, %68, %69 : vector<8x256xi1>, vector<8x256xf32>
      %c239_i32 = arith.constant 239 : i32
      %71 = tpu.dynamic_rotate %35 by %c239_i32 dim 1 : vector<8x256xf32>, i32 -> vector<8x256xf32>
      %72 = arith.andi %46, %42 : vector<8x256xi1>
      %cst_27 = arith.constant 0.000000e+00 : f32
      %73 = vector.broadcast %cst_27 : f32 to vector<8x256xf32>
      %74 = arith.select %72, %71, %73 : vector<8x256xi1>, vector<8x256xf32>
      %cst_28 = arith.constant 1.000000e+00 : f32
      %75 = vector.broadcast %cst_28 : f32 to vector<1x256xf32>
      %cst_29 = arith.constant 0.000000e+00 : f32
      %76 = vector.broadcast %cst_29 : f32 to vector<7x256xf32>
      %77 = tpu.concatenate %50, %53, %57, %60, %35, %63, %67, %70, %74, %75, %76 in 0 : vector<8x256xf32>, vector<8x256xf32>, vector<8x256xf32>, vector<8x256xf32>, vector<8x256xf32>, vector<8x256xf32>, vector<8x256xf32>, vector<8x256xf32>, vector<8x256xf32>, vector<1x256xf32>, vector<7x256xf32> -> vector<80x256xf32>
      %78 = arith.truncf %77 : vector<80x256xf32> to vector<80x256xbf16>
      %c0_30 = arith.constant 0 : index
      %c0_31 = arith.constant 0 : index
      %79 = vector.load %arg3[%c0_30, %c0_31] : memref<224x80xbf16, #tpu.memory_space<vmem>>, vector<224x80xbf16>
      %cst_32 = arith.constant dense<0.000000e+00> : vector<224x256xf32>
      %80 = tpu.matmul %79, %78, %cst_32 {dimension_numbers = #tpu.dot_dimension_numbers<[1], [0], [0], [1], [0, 0, 1, 1], [], []>} : vector<224x80xbf16>, vector<80x256xbf16>, vector<224x256xf32> -> vector<224x256xf32>
      %81 = arith.truncf %80 : vector<224x256xf32> to vector<224x256xbf16>
      %82 = vector.extract_strided_slice %81 {offsets = [0, 0], sizes = [112, 256], strides = [1, 1]} : vector<224x256xbf16> to vector<112x256xbf16>
      %c0_33 = arith.constant 0 : index
      %c0_34 = arith.constant 0 : index
      %c0_35 = arith.constant 0 : index
      %83 = vector.load %arg7[%c0_33, %c0_34, %c0_35] : memref<2x112x256xbf16, #tpu.memory_space<vmem>>, vector<1x112x256xbf16>
      %84 = vector.shape_cast %83 : vector<1x112x256xbf16> to vector<112x256xbf16>
      %85 = vector.shape_cast %82 : vector<112x256xbf16> to vector<1x112x256xbf16>
      tpu.vector_store %arg7[%c0_33, %c0_34, %c0_35], %85 {strides = array<i32>} : memref<2x112x256xbf16, #tpu.memory_space<vmem>>, vector<1x112x256xbf16>,
      %86 = vector.extract_strided_slice %81 {offsets = [112, 0], sizes = [112, 256], strides = [1, 1]} : vector<224x256xbf16> to vector<112x256xbf16>
      %c1 = arith.constant 1 : index
      %c0_36 = arith.constant 0 : index
      %c0_37 = arith.constant 0 : index
      %87 = vector.load %arg7[%c1, %c0_36, %c0_37] : memref<2x112x256xbf16, #tpu.memory_space<vmem>>, vector<1x112x256xbf16>
      %88 = vector.shape_cast %87 : vector<1x112x256xbf16> to vector<112x256xbf16>
      %89 = vector.shape_cast %86 : vector<112x256xbf16> to vector<1x112x256xbf16>
      tpu.vector_store %arg7[%c1, %c0_36, %c0_37], %89 {strides = array<i32>} : memref<2x112x256xbf16, #tpu.memory_space<vmem>>, vector<1x112x256xbf16>,
    } else {
    }
    %3 = arith.index_cast %arg1 : i32 to index
    %c0 = arith.constant 0 : index
    %c0_1 = arith.constant 0 : index
    %4 = vector.load %arg7[%3, %c0, %c0_1] : memref<2x112x256xbf16, #tpu.memory_space<vmem>>, vector<1x112x256xbf16>
    %5 = vector.shape_cast %4 : vector<1x112x256xbf16> to vector<112x256xbf16>
    %6 = vector.extract_strided_slice %5 {offsets = [0, 0], sizes = [32, 256], strides = [1, 1]} : vector<112x256xbf16> to vector<32x256xbf16>
    %7 = vector.extract_strided_slice %5 {offsets = [32, 0], sizes = [32, 256], strides = [1, 1]} : vector<112x256xbf16> to vector<32x256xbf16>
    %8 = vector.extract_strided_slice %5 {offsets = [64, 0], sizes = [48, 256], strides = [1, 1]} : vector<112x256xbf16> to vector<48x256xbf16>
    %cst = arith.constant dense<0.000000e+00> : vector<256x256xf32>
    %9 = tpu.matmul %7, %6, %cst {dimension_numbers = #tpu.dot_dimension_numbers<[0], [0], [1], [1], [0, 1, 1, 1], [], []>} : vector<32x256xbf16>, vector<32x256xbf16>, vector<256x256xf32> -> vector<256x256xf32>
    %cst_2 = arith.constant dense<0xFF800000> : vector<256xf32>
    %10 = vector.multi_reduction <maximumf>, %9, %cst_2 [0] : vector<256x256xf32> to vector<256xf32>
    %11 = vector.shape_cast %10 : vector<256xf32> to vector<1x256xf32>
    %12 = vector.broadcast %11 : vector<1x256xf32> to vector<256x256xf32>
    %13 = arith.subf %9, %12 : vector<256x256xf32>
    %14 = math.exp %13 : vector<256x256xf32>
    %15 = arith.truncf %14 : vector<256x256xf32> to vector<256x256xbf16>
    %cst_3 = arith.constant dense<0.000000e+00> : vector<48x256xf32>
    %16 = tpu.matmul %8, %15, %cst_3 {dimension_numbers = #tpu.dot_dimension_numbers<[1], [0], [0], [1], [0, 0, 1, 1], [], []>} : vector<48x256xbf16>, vector<256x256xbf16>, vector<48x256xf32> -> vector<48x256xf32>
    %17 = vector.extract_strided_slice %16 {offsets = [32, 0], sizes = [1, 256], strides = [1, 1]} : vector<48x256xf32> to vector<1x256xf32>
    %18 = vector.extract_strided_slice %16 {offsets = [0, 0], sizes = [32, 256], strides = [1, 1]} : vector<48x256xf32> to vector<32x256xf32>
    %19 = tpu.reciprocal %17 {approx = true} : vector<1x256xf32> -> vector<1x256xf32>
    %20 = vector.broadcast %19 : vector<1x256xf32> to vector<32x256xf32>
    %21 = arith.mulf %18, %20 : vector<32x256xf32>
    %22 = arith.truncf %21 : vector<32x256xf32> to vector<32x256xbf16>
    %c0_4 = arith.constant 0 : index
    %c0_5 = arith.constant 0 : index
    %c0_6 = arith.constant 0 : index
    %23 = vector.load %arg4[%c0_4, %c0_5, %c0_6] : memref<1x32x128xbf16, #tpu.memory_space<vmem>>, vector<1x32x128xbf16>
    %24 = vector.shape_cast %23 : vector<1x32x128xbf16> to vector<32x128xbf16>
    %cst_7 = arith.constant dense<0.000000e+00> : vector<256x128xf32>
    %25 = tpu.matmul %22, %24, %cst_7 {dimension_numbers = #tpu.dot_dimension_numbers<[0], [0], [1], [1], [0, 1, 1, 1], [], []>} : vector<32x256xbf16>, vector<32x128xbf16>, vector<256x128xf32> -> vector<256x128xf32>
    %c0_i32_8 = arith.constant 0 : i32
    %26 = arith.cmpi eq, %arg1, %c0_i32_8 : i32
    %27 = arith.extui %26 : i1 to i32
    %c0_i32_9 = arith.constant 0 : i32
    %28 = arith.cmpi ne, %27, %c0_i32_9 : i32
    scf.if %28 {
      %c0_12 = arith.constant 0 : index
      %c0_13 = arith.constant 0 : index
      %32 = vector.load %arg5[%c0_12, %c0_13] : memref<1x128xf32, #tpu.memory_space<vmem>>, vector<1x128xf32>
      %33 = vector.broadcast %32 : vector<1x128xf32> to vector<256x128xf32>
      %34 = arith.addf %25, %33 : vector<256x128xf32>
      %c0_14 = arith.constant 0 : index
      %c0_15 = arith.constant 0 : index
      %c0_16 = arith.constant 0 : index
      %35 = vector.load %arg6[%c0_14, %c0_15, %c0_16] : memref<1x256x128xf32, #tpu.memory_space<vmem>>, vector<1x256x128xf32>
      %36 = vector.shape_cast %35 : vector<1x256x128xf32> to vector<256x128xf32>
      %37 = vector.shape_cast %34 : vector<256x128xf32> to vector<1x256x128xf32>
      tpu.vector_store %arg6[%c0_14, %c0_15, %c0_16], %37 {strides = array<i32>} : memref<1x256x128xf32, #tpu.memory_space<vmem>>, vector<1x256x128xf32>,
    } else {
    }
    %c0_i32_10 = arith.constant 0 : i32
    %29 = arith.cmpi ne, %arg1, %c0_i32_10 : i32
    %30 = arith.extui %29 : i1 to i32
    %c0_i32_11 = arith.constant 0 : i32
    %31 = arith.cmpi ne, %30, %c0_i32_11 : i32
    scf.if %31 {
      %c0_12 = arith.constant 0 : index
      %c0_13 = arith.constant 0 : index
      %c0_14 = arith.constant 0 : index
      %32 = vector.load %arg6[%c0_12, %c0_13, %c0_14] : memref<1x256x128xf32, #tpu.memory_space<vmem>>, vector<1x256x128xf32>
      %33 = vector.shape_cast %32 : vector<1x256x128xf32> to vector<256x128xf32>
      %34 = arith.addf %33, %25 : vector<256x128xf32>
      %c0_15 = arith.constant 0 : index
      %c0_16 = arith.constant 0 : index
      %c0_17 = arith.constant 0 : index
      %35 = vector.load %arg6[%c0_15, %c0_16, %c0_17] : memref<1x256x128xf32, #tpu.memory_space<vmem>>, vector<1x256x128xf32>
      %36 = vector.shape_cast %35 : vector<1x256x128xf32> to vector<256x128xf32>
      %37 = vector.shape_cast %34 : vector<256x128xf32> to vector<1x256x128xf32>
      tpu.vector_store %arg6[%c0_15, %c0_16, %c0_17], %37 {strides = array<i32>} : memref<1x256x128xf32, #tpu.memory_space<vmem>>, vector<1x256x128xf32>,
    } else {
    }
    return
  }
  func.func @transform_0(%arg0: i32, %arg1: i32) -> (i32, i32, i32) {
    %c0_i32 = arith.constant 0 : i32
    %c0_i32_0 = arith.constant 0 : i32
    %c0_i32_1 = arith.constant 0 : i32
    return %arg0, %c0_i32, %c0_i32_0 : i32, i32, i32
  }
  func.func @transform_1(%arg0: i32, %arg1: i32) -> (i32, i32) {
    %c0_i32 = arith.constant 0 : i32
    %c0_i32_0 = arith.constant 0 : i32
    %c0_i32_1 = arith.constant 0 : i32
    return %c0_i32, %c0_i32_0 : i32, i32
  }
  func.func @transform_2(%arg0: i32, %arg1: i32) -> (i32, i32, i32) {
    %c0_i32 = arith.constant 0 : i32
    %c0_i32_0 = arith.constant 0 : i32
    %c0_i32_1 = arith.constant 0 : i32
    return %arg1, %c0_i32, %c0_i32_0 : i32, i32, i32
  }
  func.func @transform_3(%arg0: i32, %arg1: i32) -> (i32, i32) {
    %c0_i32 = arith.constant 0 : i32
    %c0_i32_0 = arith.constant 0 : i32
    %c0_i32_1 = arith.constant 0 : i32
    return %c0_i32, %c0_i32_0 : i32, i32
  }
  func.func @transform_4(%arg0: i32, %arg1: i32) -> (i32, i32, i32) {
    %c0_i32 = arith.constant 0 : i32
    %c0_i32_0 = arith.constant 0 : i32
    %c0_i32_1 = arith.constant 0 : i32
    return %arg0, %c0_i32, %c0_i32_0 : i32, i32, i32
  }
}

</mosaic_0001>

<bundles_post_ra>
// kernel: _lambda_.1
= control target key start
LH: loop header
LB: loop body
LE: loop exit
PB: predicated region body
PF: predicated region fallthrough
CT: control target
= control target key end

     0   :  { %s2464_s15 = smov 0   ;;  %s2466_s16 = smov 0   ;;  %s3405_s0 = inlined_call_operand.vmem [shape: f32[2,4,256], index: 0, kind: input, shape index: {}]   ;;  %s3406_s1 = inlined_call_operand.vmem [shape: bf16[224,80], index: 1, kind: input, shape index: {}]   ;;  %s3407_s2 = inlined_call_operand.vmem [shape: bf16[2,32,128], index: 2, kind: input, shape index: {}]   ;;  %s3408_s3 = inlined_call_operand.vmem [shape: f32[1,128], index: 3, kind: input, shape index: {}]   ;;  %s3409_s4 = inlined_call_operand.vmem [shape: f32[2,256,128], index: 4, kind: output, shape index: {}]  }
   0x1   :  { %s2468_s17 = smov 0   ;;  %s2470_s18 = smov 0  }
   0x2   :  { %s2472_s19 = smov 0  }
   0x3 LB: > { %s23_s20 = sadd.s32 1, %s2420_s17  ;;  %s26_s21 = sadd.s32 1, %s2424_s18  ;;  %s2428_s19 = sphi %s2472_s19, %s14_s19   ;;  %s2424_s18 = sphi %s2470_s18, %s3478_s18   ;;  %s2420_s17 = sphi %s2468_s17, %s3477_s17   ;;  %s2416_s16 = sphi %s2466_s16, %s3476_s16   ;;  %s2412_s15 = sphi %s2464_s15, %s3475_s15  }
   0x4   : > { %p24_p0 = scmp.ge.s32.totalorder %s23_s20, 2  ;;  %p1882_p1 = scmp.ge.s32.totalorder %s2428_s19, 1 }
   0x5   : > { %p184_p2 = scmp.lt.s32.totalorder %s2428_s19, 5 }
   0x6   : > { %s3480_s20 = smov (%p24_p0, %s23_s20), 0  ;;  %s3482_s21 = smov (!%p24_p0, %s26_s21), %s2424_s18 }
   0x7   : > { %p185_p3 = pnand %p1882_p1, %p184_p2  ;;  %p28_p4 = scmp.ge.s32.totalorder %s3482_s21, 2 }
   0x9   : > { %s3484_s21 = smov (%p28_p4, %s3482_s21), 0  ;;  %188 = sbr.rel (%p185_p3) target bundleno = 1809 (0x711), region = 36 }
   0xe   : > { %p215_p5 = scmp.lt.s32.totalorder %s2416_s16, 1  ;;  %p220_p6 = scmp.lt.s32.totalorder %s2412_s15, 1 }
   0xf   : > { %p1889_p7 = scmp.ne.s32.totalorder %s2412_s15, 0 }
  0x10   : > { %s3486_s16 = smov (!%p215_p5, %s2416_s16), 1  ;;  %s2430_s9 = smov (!%p1889_p7), 111  }
  0x11   : > { %s221_s22 = scalar_select %p220_p6, %s2412_s15, 1 }
  0x12   : > { %s2121_s23 = sshll.u32 %s3486_s16, 3  ;;  %s2123_s24 = sshll.u32 %s3486_s16, 8 }
  0x13   : > { %s219_s27 = scalar_lea.vmem %s3405_s0, %s2121_s23  ;;  %s2122_s28 = sshll.u32 %s221_s22, 4 }
  0x14   : > { %s2504_s5 = scalar_lea.vmem %s3407_s2, %s2122_s28  ;;  %s2509_s8 = scalar_lea.vmem %s3409_s4, %s2123_s24 }
  0x15   : > { %234 = sbr.rel (%p1889_p7) target bundleno = 421 (0x1a5), region = 40  ;;  %s2431_s10 = smov (!%p1889_p7), 112  }
  0x16   : > { %s2432_s11 = smov (!%p1889_p7), 15   ;;  %s2433_s12 = smov (!%p1889_p7), 113  }
  0x17   : > { %s2434_s13 = smov (!%p1889_p7), 127   ;;  %s2435_s14 = smov (!%p1889_p7), 1  }
  0x18   : > { %s2436_s16 = smov (!%p1889_p7), 16   ;;  %s2437_s22 = smov (!%p1889_p7), 17  }
  0x1a   : > { %v235_v0 = vld [vmem:[%s219_s27] sm:$0xff]  ;;  %vm242_vm0 = vcmask 1043456   ;;  %v245_v6 = vlaneseq  ;;  %vm338_vm5 = vcmask 1040384   ;;  %vm2438_vm15 = vmmov 1  }
  0x1b   : > { %237 = vst [vmem:[#allocation1] ss:$2 sm:$0xff] %v235_v0  ;;  %v2128_v12 = vld [vmem:[%s3406_s1 + $0x20] sm:$0xff] }
  0x1c   : > { %v2522_v7 = vand.u32 127, %v245_v6  ;;  %v2125_v6 = vld [vmem:[%s3406_s1 + $0x8] sm:$0xff]  ;;  %v2136_v15 = vld [vmem:[%s3406_s1 + $0x60] sm:$0xff] }
  0x1e   : > { %v247_v8 = vadd.s32 128, %v2522_v7  ;;  %v248_v10 = vand.u32 15, %v2522_v7  ;;  %vm331_vm4 = vcmp.lt.s32.totalorder %v2522_v7, 111  ;;  %vm322_vm11 = vcmp.lt.s32.totalorder %v2522_v7, 112 }
  0x1f   : > { %vm311_vm12 = vcmp.lt.s32.totalorder %v2522_v7, 113  ;;  %vm302_vm13 = vcmp.lt.s32.totalorder %v2522_v7, 127 }
  0x20   : > { %v249_v9 = vand.u32 15, %v247_v8  ;;  %vm257_vm2 = vcmp.lt.s32.totalorder %v247_v8, 240  ;;  %vm2532_vm3 = vcmp.le.s32.totalorder %v248_v10, 14  ;;  %vm2546_vm10 = vcmp.ge.s32.totalorder %v248_v10, 1  ;;  %v2126_v8 = vld [vmem:[%s3406_s1 + $0x10] sm:$0xff]  ;;  %v2127_v10 = vld [vmem:[%s3406_s1 + $0x18] sm:$0xff] }
  0x21   : > { %vm1946_vm7 = vmpackc.low %vm338_vm5, %vm2532_vm3 }
  0x22   : > { %v2514_v1 = vld.sshfl [vmem:[#allocation1] sm:$0xff pattern:$0x75316420]  ;;  %v2516_v2 = vld.sshfl [vmem:[#allocation1 + $0x8] sm:$0xff pattern:$0x75316420] }
  0x23   : > { %v243_v3 = vsel %vm242_vm0, %v2514_v1, 0.0  ;;  %v244_v4 = vsel %vm242_vm0, %v2516_v2, 0.0  ;;  %vm2528_vm1 = vcmp.le.s32.totalorder %v249_v9, 14  ;;  %vm2542_vm9 = vcmp.ge.s32.totalorder %v249_v9, 1  ;;  %v2133_v9 = vld [vmem:[%s3406_s1 + $0x48] sm:$0xff] }
  0x24   : > { %v2217_v5 = vpack.i.bf16 %v244_v4, %v243_v3  ;;  %vm335_vm6 = vmand %vm257_vm2, %vm2528_vm1  ;;  %v2124_v4 = vld [vmem:[%s3406_s1] sm:$0xff] }
  0x25   : > { %vm1975_vm8 = vmpackc.low %vm338_vm5, %vm335_vm6  ;;  %vm254_vm6 = vcmp.ge.s32.totalorder %v2522_v7, 16 }
  0x26   : > { %2218 = vrot.lane.b32.xlu0 %v2217_v5, %s2430_s9  ;;  %2228 = vrot.lane.b32.xlu1 %v2217_v5, %s2431_s10  ;;  %vm315_vm14 = vmand %vm257_vm2, %vm2542_vm9 }
  0x27   : > { %2238 = vrot.lane.b32.xlu2 %v2217_v5, %s2432_s11  ;;  %vm1978_vm5 = vmpackc.low %vm257_vm2, %vm315_vm14 }
  0x28   : > { %vm2586_vm2 = vmand %vm254_vm6, %vm2532_vm3 }
  0x29   : > { %vm1984_vm14 = vmpackc.low %vm2542_vm9, %vm2528_vm1 }
  0x2e   : > { %2223 = vrot.lane.b32.xlu0 %v2217_v5, %s2433_s12  ;;  %2233 = vrot.lane.b32.xlu1 %v2217_v5, %s2434_s13 }
  0x2f   : > { %2243 = vrot.lane.b32.xlu2 %v2217_v5, %s2435_s14 }
  0x36   : > { %2253 = vrot.lane.b32.xlu1 %v2217_v5, %s2436_s16  ;;  %2248 = vrot.lane.b32.xlu0 %v2217_v5, %s2437_s22  ;;  %v2131_v5 = vld [vmem:[%s3406_s1 + $0x38] sm:$0xff] }
  0x81   : > { %v2526_v11 = vpop.permute.xlu2 %2238 }
  0x82   : > { %v2241_v27 = vunpack.i.h.bf16 %v2526_v11  ;;  %v2240_v34 = vunpack.i.l.bf16 %v2526_v11  ;;  %v2134_v11 = vld [vmem:[%s3406_s1 + $0x50] sm:$0xff] }
  0x89   : > { %v2244_v25 = vpop.permute.xlu2 %2243 }
  0x8a   : > { %v2246_v35 = vunpack.i.h.bf16 %v2244_v25  ;;  %v2245_v36 = vunpack.i.l.bf16 %v2244_v25 }
  0x98   : > { %v2219_v13 = vpop.permute.xlu0 %2218  ;;  %v2229_v14 = vpop.permute.xlu1 %2228 }
  0x99   : > { %v2221_v16 = vunpack.i.h.bf16 %v2219_v13  ;;  %v2220_v17 = vunpack.i.l.bf16 %v2219_v13  ;;  %v2231_v22 = vunpack.i.h.bf16 %v2229_v14  ;;  %v2230_v23 = vunpack.i.l.bf16 %v2229_v14  ;;  %v2135_v13 = vld [vmem:[%s3406_s1 + $0x58] sm:$0xff]  ;;  %v2129_v14 = vld [vmem:[%s3406_s1 + $0x28] sm:$0xff] }
  0x9b   : > { %v332_v18 = vsel %vm331_vm4, %v2220_v17, %v2221_v16  ;;  %v333_v19 = vsel %vm331_vm4, %v2221_v16, %v2220_v17  ;;  %v323_v37 = vsel %vm322_vm11, %v2230_v23, %v2231_v22  ;;  %vm1949_vm4 = vmpackc.low %vm2438_vm15, %vm2546_vm10  ;;  %v324_v40 = vsel %vm322_vm11, %v2231_v22, %v2230_v23  ;;  %v2130_v16 = vld [vmem:[%s3406_s1 + $0x30] sm:$0xff]  ;;  %v2137_v17 = vld [vmem:[%s3406_s1 + $0x68] sm:$0xff] }
  0x9c   : > { %v1947_v20 = vpack.c.bf16 1.0, %v332_v18  ;;  %v1976_v21 = vpack.c.bf16 1.0, %v333_v19  ;;  %vm2576_vm11 = vmpackc.low %vm2532_vm3, %vm242_vm0  ;;  %vm262_vm3 = vcmp.lt.s32.totalorder %v2522_v7, 17 }
  0x9e   : > { %1948 = vmatpush.bf16.msk.msra.mxu0 %vm1946_vm7, %v1947_v20  ;;  %2155 = vmatpush.bf16.msk.msra.mxu2 %vm1946_vm7, %v1947_v20  ;;  %vm282_vm7 = vcmp.lt.s32.totalorder %v2522_v7, 15 }
  0x9f   : > { %1977 = vmatpush.bf16.msk.msra.mxu1 %vm1975_vm8, %v1976_v21  ;;  %2160 = vmatpush.bf16.msk.msra.mxu3 %vm1975_vm8, %v1976_v21  ;;  %vm293_vm8 = vcmp.lt.s32.totalorder %v2522_v7, 1  ;;  %v284_v52 = vsel %vm282_vm7, %v2241_v27, %v2240_v34  ;;  %v283_v58 = vsel %vm282_vm7, %v2240_v34, %v2241_v27 }
  0xa0   : > { %v2224_v28 = vpop.permute.xlu0 %2223  ;;  %v2234_v29 = vpop.permute.xlu1 %2233  ;;  %v295_v53 = vsel %vm293_vm8, %v2246_v35, %v2245_v36  ;;  %v294_v59 = vsel %vm293_vm8, %v2245_v36, %v2246_v35 }
  0xa1   : > { %v2226_v30 = vunpack.i.h.bf16 %v2224_v28  ;;  %v2225_v31 = vunpack.i.l.bf16 %v2224_v28  ;;  %v2236_v32 = vunpack.i.h.bf16 %v2234_v29  ;;  %v2235_v33 = vunpack.i.l.bf16 %v2234_v29 }
  0xa2   : > { %v1956_v62 = vpack.c.bf16 %v295_v53, %v284_v52 }
  0xa3   : > { %v312_v38 = vsel %vm311_vm12, %v2225_v31, %v2226_v30  ;;  %v313_v39 = vsel %vm311_vm12, %v2226_v30, %v2225_v31  ;;  %v303_v41 = vsel %vm302_vm13, %v2235_v33, %v2236_v32  ;;  %v304_v44 = vsel %vm302_vm13, %v2236_v32, %v2235_v33  ;;  %vm2593_vm12 = vmpackc.low %vm2528_vm1, %vm242_vm0 }
  0xa4   : > { %v1950_v42 = vpack.c.bf16 %v323_v37, %v312_v38  ;;  %v1979_v43 = vpack.c.bf16 %v324_v40, %v313_v39  ;;  %v1953_v46 = vpack.c.bf16 %v303_v41, %v2514_v1  ;;  %v1982_v47 = vpack.c.bf16 %v304_v44, %v2516_v2  ;;  %vm1955_vm0 = vmpackc.low %vm2546_vm10, %vm2586_vm2 }
  0xa5   : > { %vm273_vm13 = vcmp.lt.s32.totalorder %v2522_v7, 16  ;;  %v1985_v1 = vpack.c.bf16 %v294_v59, %v283_v58  ;;  %v2132_v7 = vld [vmem:[%s3406_s1 + $0x40] sm:$0xff] }
  0xa6   : > { %1951 = vmatpush.bf16.msk.msra.mxu0 %vm1949_vm4, %v1950_v42  ;;  %2156 = vmatpush.bf16.msk.msra.mxu2 %vm1949_vm4, %v1950_v42  ;;  %vm265_vm4 = vmand %vm254_vm6, %vm2546_vm10 }
  0xa7   : > { %1980 = vmatpush.bf16.msk.msra.mxu1 %vm1978_vm5, %v1979_v43  ;;  %2161 = vmatpush.bf16.msk.msra.mxu3 %vm1978_vm5, %v1979_v43  ;;  %vm1958_vm1 = vmpackc.low %vm254_vm6, %vm265_vm4  ;;  %vm448_vm5 = vcmask 654336  }
  0xa8   : > { %v2254_v50 = vpop.permute.xlu1 %2253  ;;  %v2249_v51 = vpop.permute.xlu0 %2248  ;;  %vm1987_vm10 = vmpackc.low %vm2438_vm15, %vm2542_vm9 }
  0xa9   : > { %v2256_v54 = vunpack.i.h.bf16 %v2254_v50  ;;  %v2255_v55 = vunpack.i.l.bf16 %v2254_v50  ;;  %v2251_v56 = vunpack.i.h.bf16 %v2249_v51  ;;  %v2250_v57 = vunpack.i.l.bf16 %v2249_v51 }
  0xaa   : > { %1954 = vmatpush.bf16.msk.msra.mxu0 %vm2576_vm11, %v1953_v46  ;;  %2157 = vmatpush.bf16.msk.msra.mxu2 %vm2576_vm11, %v1953_v46 }
  0xab   : > { %1983 = vmatpush.bf16.msk.msra.mxu1 %vm2593_vm12, %v1982_v47  ;;  %2162 = vmatpush.bf16.msk.msra.mxu3 %vm2593_vm12, %v1982_v47  ;;  %v264_v60 = vsel %vm262_vm3, %v2251_v56, %v2250_v57  ;;  %v275_v61 = vsel %vm273_vm13, %v2256_v54, %v2255_v55  ;;  %v263_v63 = vsel %vm262_vm3, %v2250_v57, %v2251_v56 }
  0xac   : > { %v274_v0 = vsel %vm273_vm13, %v2255_v55, %v2256_v54  ;;  %v1959_v2 = vpack.c.bf16 %v275_v61, %v264_v60 }
  0xad   : > { %v1988_v3 = vpack.c.bf16 %v274_v0, %v263_v63 }
  0xae   : > { %1957 = vmatpush.bf16.msk.msra.mxu0 %vm1955_vm0, %v1956_v62  ;;  %2158 = vmatpush.bf16.msk.msra.mxu2 %vm1955_vm0, %v1956_v62 }
  0xaf   : > { %1986 = vmatpush.bf16.msk.msra.mxu1 %vm1984_vm14, %v1985_v1  ;;  %2163 = vmatpush.bf16.msk.msra.mxu3 %vm1984_vm14, %v1985_v1 }
  0xb2   : > { %1960 = vmatpush.bf16.msk.msra.mxu0 %vm1958_vm1, %v1959_v2  ;;  %2159 = vmatpush.bf16.msk.msra.mxu2 %vm1958_vm1, %v1959_v2 }
  0xb3   : > { %1989 = vmatpush.bf16.msk.msra.mxu1 %vm1987_vm10, %v1988_v3  ;;  %2164 = vmatpush.bf16.msk.msra.mxu3 %vm1987_vm10, %v1988_v3 }
  0xb5   : > { %1961 = vmatmul.msk.bf16.vlgmr.msra.gmra.mxu0 %vm448_vm5, %v2124_v4  ;;  %1968 = vmatmul.msk.bf16.vlgmr.msra.gmra.mxu2 %vm448_vm5, %v2131_v5 }
  0xb6   : > { %1990 = vmatmul.msk.bf16.vlgmr.msra.gmra.mxu1 %vm448_vm5, %v2124_v4  ;;  %1997 = vmatmul.msk.bf16.vlgmr.msra.gmra.mxu3 %vm448_vm5, %v2131_v5 }
  0xc5   : > { %1962 = vmatmul.msk.bf16.gmra.mxu0 %vm448_vm5, %v2125_v6  ;;  %1969 = vmatmul.msk.bf16.gmra.mxu2 %vm448_vm5, %v2132_v7 }
  0xc6   : > { %1991 = vmatmul.msk.bf16.gmra.mxu1 %vm448_vm5, %v2125_v6  ;;  %1998 = vmatmul.msk.bf16.gmra.mxu3 %vm448_vm5, %v2132_v7 }
  0xd5   : > { %1963 = vmatmul.msk.bf16.gmra.mxu0 %vm448_vm5, %v2126_v8  ;;  %1970 = vmatmul.msk.bf16.gmra.mxu2 %vm448_vm5, %v2133_v9 }
  0xd6   : > { %1992 = vmatmul.msk.bf16.gmra.mxu1 %vm448_vm5, %v2126_v8  ;;  %1999 = vmatmul.msk.bf16.gmra.mxu3 %vm448_vm5, %v2133_v9 }
  0xe5   : > { %1964 = vmatmul.msk.bf16.gmra.mxu0 %vm448_vm5, %v2127_v10  ;;  %1971 = vmatmul.msk.bf16.gmra.mxu2 %vm448_vm5, %v2134_v11 }
  0xe6   : > { %1993 = vmatmul.msk.bf16.gmra.mxu1 %vm448_vm5, %v2127_v10  ;;  %2000 = vmatmul.msk.bf16.gmra.mxu3 %vm448_vm5, %v2134_v11 }
  0xf5   : > { %1965 = vmatmul.msk.bf16.gmra.mxu0 %vm448_vm5, %v2128_v12  ;;  %1972 = vmatmul.msk.bf16.gmra.mxu2 %vm448_vm5, %v2135_v13 }
  0xf6   : > { %1994 = vmatmul.msk.bf16.gmra.mxu1 %vm448_vm5, %v2128_v12  ;;  %2001 = vmatmul.msk.bf16.gmra.mxu3 %vm448_vm5, %v2135_v13 }
 0x105   : > { %1966 = vmatmul.msk.bf16.gmra.mxu0 %vm448_vm5, %v2129_v14  ;;  %1973 = vmatmul.msk.bf16.gmra.mxu2 %vm448_vm5, %v2136_v15 }
 0x106   : > { %1995 = vmatmul.msk.bf16.gmra.mxu1 %vm448_vm5, %v2129_v14  ;;  %2002 = vmatmul.msk.bf16.gmra.mxu3 %vm448_vm5, %v2136_v15 }
 0x115   : > { %1967 = vmatmul.msk.bf16.gmra.mxu0 %vm448_vm5, %v2130_v16  ;;  %1974 = vmatmul.msk.bf16.gmra.mxu2 %vm448_vm5, %v2137_v17 }
 0x116   : > { %1996 = vmatmul.msk.bf16.gmra.mxu1 %vm448_vm5, %v2130_v16  ;;  %2003 = vmatmul.msk.bf16.gmra.mxu3 %vm448_vm5, %v2137_v17 }
 0x132   : > { %v500_v18 = vpop.f32.mrf.mxu0 }
 0x133   : > { %v579_v19 = vpop.f32.mrf.mxu1 }
 0x134   : > { %v649_v20 = vpack.c.bf16 %v579_v19, %v500_v18 }
 0x136   : > { %677 = vst [vmem:[#allocation2] sm:$0xff] %v649_v20 }
 0x138   : > { %v535_v21 = vpop.f32.mrf.mxu2 }
 0x139   : > { %v614_v22 = vpop.f32.mrf.mxu3 }
 0x13a   : > { %v663_v23 = vpack.c.bf16 %v614_v22, %v535_v21  ;;  %v502_v24 = vpop.f32.mrf.mxu0 }
 0x13b   : > { %v581_v25 = vpop.f32.mrf.mxu1 }
 0x13c   : > { %692 = vst [vmem:[#allocation2 + $0x70] sm:$0xff] %v663_v23  ;;  %v650_v26 = vpack.c.bf16 %v581_v25, %v502_v24 }
 0x13e   : > { %678 = vst [vmem:[#allocation2 + $0x8] sm:$0xff] %v650_v26 }
 0x140   : > { %v537_v27 = vpop.f32.mrf.mxu2 }
 0x141   : > { %v616_v28 = vpop.f32.mrf.mxu3 }
 0x142   : > { %v664_v29 = vpack.c.bf16 %v616_v28, %v537_v27  ;;  %v505_v30 = vpop.f32.mrf.mxu0 }
 0x143   : > { %v584_v31 = vpop.f32.mrf.mxu1 }
 0x144   : > { %693 = vst [vmem:[#allocation2 + $0x78] sm:$0xff] %v664_v29  ;;  %v651_v32 = vpack.c.bf16 %v584_v31, %v505_v30 }
 0x146   : > { %679 = vst [vmem:[#allocation2 + $0x10] sm:$0xff] %v651_v32 }
 0x148   : > { %v540_v33 = vpop.f32.mrf.mxu2 }
 0x149   : > { %v619_v34 = vpop.f32.mrf.mxu3 }
 0x14a   : > { %v665_v35 = vpack.c.bf16 %v619_v34, %v540_v33  ;;  %v507_v36 = vpop.f32.mrf.mxu0 }
 0x14b   : > { %v586_v37 = vpop.f32.mrf.mxu1 }
 0x14c   : > { %694 = vst [vmem:[#allocation2 + $0x80] sm:$0xff] %v665_v35  ;;  %v652_v38 = vpack.c.bf16 %v586_v37, %v507_v36 }
 0x14e   : > { %680 = vst [vmem:[#allocation2 + $0x18] sm:$0xff] %v652_v38 }
 0x150   : > { %v542_v39 = vpop.f32.mrf.mxu2 }
 0x151   : > { %v621_v40 = vpop.f32.mrf.mxu3 }
 0x152   : > { %v666_v41 = vpack.c.bf16 %v621_v40, %v542_v39  ;;  %v510_v42 = vpop.f32.mrf.mxu0 }
 0x153   : > { %v589_v43 = vpop.f32.mrf.mxu1 }
 0x154   : > { %695 = vst [vmem:[#allocation2 + $0x88] sm:$0xff] %v666_v41  ;;  %v653_v44 = vpack.c.bf16 %v589_v43, %v510_v42 }
 0x156   : > { %681 = vst [vmem:[#allocation2 + $0x20] sm:$0xff] %v653_v44 }
 0x158   : > { %v545_v45 = vpop.f32.mrf.mxu2 }
 0x159   : > { %v624_v46 = vpop.f32.mrf.mxu3 }
 0x15a   : > { %v667_v47 = vpack.c.bf16 %v624_v46, %v545_v45  ;;  %v512_v48 = vpop.f32.mrf.mxu0 }
 0x15b   : > { %v591_v49 = vpop.f32.mrf.mxu1 }
 0x15c   : > { %696 = vst [vmem:[#allocation2 + $0x90] sm:$0xff] %v667_v47  ;;  %v654_v50 = vpack.c.bf16 %v591_v49, %v512_v48 }
 0x15e   : > { %682 = vst [vmem:[#allocation2 + $0x28] sm:$0xff] %v654_v50 }
 0x160   : > { %v547_v51 = vpop.f32.mrf.mxu2 }
 0x161   : > { %v626_v52 = vpop.f32.mrf.mxu3 }
 0x162   : > { %v668_v53 = vpack.c.bf16 %v626_v52, %v547_v51  ;;  %v515_v54 = vpop.f32.mrf.mxu0 }
 0x163   : > { %v594_v55 = vpop.f32.mrf.mxu1 }
 0x164   : > { %697 = vst [vmem:[#allocation2 + $0x98] sm:$0xff] %v668_v53  ;;  %v655_v56 = vpack.c.bf16 %v594_v55, %v515_v54 }
 0x166   : > { %683 = vst [vmem:[#allocation2 + $0x30] sm:$0xff] %v655_v56 }
 0x168   : > { %v550_v57 = vpop.f32.mrf.mxu2 }
 0x169   : > { %v629_v58 = vpop.f32.mrf.mxu3 }
 0x16a   : > { %v669_v59 = vpack.c.bf16 %v629_v58, %v550_v57  ;;  %v517_v60 = vpop.f32.mrf.mxu0 }
 0x16b   : > { %v596_v61 = vpop.f32.mrf.mxu1 }
 0x16c   : > { %698 = vst [vmem:[#allocation2 + $0xa0] sm:$0xff] %v669_v59  ;;  %v656_v62 = vpack.c.bf16 %v596_v61, %v517_v60 }
 0x16e   : > { %684 = vst [vmem:[#allocation2 + $0x38] sm:$0xff] %v656_v62 }
 0x170   : > { %v552_v63 = vpop.f32.mrf.mxu2 }
 0x171   : > { %v631_v0 = vpop.f32.mrf.mxu3 }
 0x172   : > { %v670_v1 = vpack.c.bf16 %v631_v0, %v552_v63  ;;  %v520_v2 = vpop.f32.mrf.mxu0 }
 0x173   : > { %v599_v3 = vpop.f32.mrf.mxu1 }
 0x174   : > { %699 = vst [vmem:[#allocation2 + $0xa8] sm:$0xff] %v670_v1  ;;  %v657_v4 = vpack.c.bf16 %v599_v3, %v520_v2 }
 0x176   : > { %685 = vst [vmem:[#allocation2 + $0x40] sm:$0xff] %v657_v4 }
 0x178   : > { %v555_v5 = vpop.f32.mrf.mxu2 }
 0x179   : > { %v634_v6 = vpop.f32.mrf.mxu3 }
 0x17a   : > { %v671_v7 = vpack.c.bf16 %v634_v6, %v555_v5  ;;  %v522_v8 = vpop.f32.mrf.mxu0 }
 0x17b   : > { %v601_v9 = vpop.f32.mrf.mxu1 }
 0x17c   : > { %700 = vst [vmem:[#allocation2 + $0xb0] sm:$0xff] %v671_v7  ;;  %v658_v10 = vpack.c.bf16 %v601_v9, %v522_v8 }
 0x17e   : > { %686 = vst [vmem:[#allocation2 + $0x48] sm:$0xff] %v658_v10 }
 0x180   : > { %v557_v11 = vpop.f32.mrf.mxu2 }
 0x181   : > { %v636_v12 = vpop.f32.mrf.mxu3 }
 0x182   : > { %v672_v13 = vpack.c.bf16 %v636_v12, %v557_v11  ;;  %v525_v14 = vpop.f32.mrf.mxu0 }
 0x183   : > { %v604_v15 = vpop.f32.mrf.mxu1 }
 0x184   : > { %701 = vst [vmem:[#allocation2 + $0xb8] sm:$0xff] %v672_v13  ;;  %v659_v16 = vpack.c.bf16 %v604_v15, %v525_v14 }
 0x186   : > { %687 = vst [vmem:[#allocation2 + $0x50] sm:$0xff] %v659_v16 }
 0x188   : > { %v560_v17 = vpop.f32.mrf.mxu2 }
 0x189   : > { %v639_v18 = vpop.f32.mrf.mxu3 }
 0x18a   : > { %v673_v19 = vpack.c.bf16 %v639_v18, %v560_v17  ;;  %v527_v20 = vpop.f32.mrf.mxu0 }
 0x18b   : > { %v606_v21 = vpop.f32.mrf.mxu1 }
 0x18c   : > { %702 = vst [vmem:[#allocation2 + $0xc0] sm:$0xff] %v673_v19  ;;  %v660_v22 = vpack.c.bf16 %v606_v21, %v527_v20 }
 0x18e   : > { %688 = vst [vmem:[#allocation2 + $0x58] sm:$0xff] %v660_v22 }
 0x190   : > { %v562_v23 = vpop.f32.mrf.mxu2 }
 0x191   : > { %v641_v24 = vpop.f32.mrf.mxu3 }
 0x192   : > { %v674_v25 = vpack.c.bf16 %v641_v24, %v562_v23  ;;  %v530_v26 = vpop.f32.mrf.mxu0 }
 0x193   : > { %v609_v27 = vpop.f32.mrf.mxu1 }
 0x194   : > { %703 = vst [vmem:[#allocation2 + $0xc8] sm:$0xff] %v674_v25  ;;  %v661_v28 = vpack.c.bf16 %v609_v27, %v530_v26 }
 0x196   : > { %689 = vst [vmem:[#allocation2 + $0x60] sm:$0xff] %v661_v28 }
 0x198   : > { %v565_v29 = vpop.f32.mrf.mxu2 }
 0x199   : > { %v644_v30 = vpop.f32.mrf.mxu3 }
 0x19a   : > { %v675_v31 = vpack.c.bf16 %v644_v30, %v565_v29  ;;  %v532_v32 = vpop.f32.mrf.mxu0 }
 0x19b   : > { %v611_v33 = vpop.f32.mrf.mxu1 }
 0x19c   : > { %704 = vst [vmem:[#allocation2 + $0xd0] sm:$0xff] %v675_v31  ;;  %v662_v34 = vpack.c.bf16 %v611_v33, %v532_v32 }
 0x19e   : > { %690 = vst [vmem:[#allocation2 + $0x68] sm:$0xff] %v662_v34 }
 0x1a0   : > { %v567_v35 = vpop.f32.mrf.mxu2 }
 0x1a1   : > { %v646_v36 = vpop.f32.mrf.mxu3 }
 0x1a2   : > { %v676_v37 = vpack.c.bf16 %v646_v36, %v567_v35 }
 0x1a4   : > { %705 = vst [vmem:[#allocation2 + $0xd8] sm:$0xff] %v676_v37 }
 0x1a5 PF: > { %s2138_s9 = smul.u32 112, %s2412_s15  ;;  %vm787_vm9 = vcmask 261120  }
 0x1a7   : > { %s2711_s10 = scalar_lea.vmem [#allocation2], %s2138_s9 }
 0x1ab   : > { %v2143_v38 = vld [vmem:[%s2711_s10 + $0x24] sm:$0xf]  ;;  %v2007_v39 = vld [vmem:[%s2711_s10 + $0x20] sm:$0xf]  ;;  %v2009_v40 = vld [vmem:[%s2711_s10 + $0x28] sm:$0xf0] }
 0x1ac   : > { %v2144_v41 = vld [vmem:[%s2711_s10 + $0x24] sm:$0xf0]  ;;  %v2012_v42 = vor.u32 %v2143_v38, %v2009_v40  ;;  %v2031_v44 = vld [vmem:[%s2711_s10 + $0x10] sm:$0xf]  ;;  %v2142_v45 = vld [vmem:[%s2711_s10 + $0x14] sm:$0xf0] }
 0x1ad   : > { %v2008_v43 = vor.u32 %v2144_v41, %v2007_v39  ;;  %v2141_v46 = vld [vmem:[%s2711_s10 + $0x14] sm:$0xf]  ;;  %v2033_v47 = vld [vmem:[%s2711_s10 + $0x18] sm:$0xf0]  ;;  %v2032_v48 = vor.u32 %v2142_v45, %v2031_v44  ;;  %v2023_v50 = vld [vmem:[%s2711_s10] sm:$0xf] }
 0x1ae   : > { %v2036_v49 = vor.u32 %v2141_v46, %v2033_v47  ;;  %v2140_v51 = vld [vmem:[%s2711_s10 + $0x4] sm:$0xf0]  ;;  %v2139_v52 = vld [vmem:[%s2711_s10 + $0x4] sm:$0xf]  ;;  %v2025_v53 = vld [vmem:[%s2711_s10 + $0x8] sm:$0xf0] }
 0x1af   : > { %743 = vxpose.binary.xlu0.c.b16.start [1/4] (short) %v2012_v42, %v2008_v43, 128  ;;  %v2024_v54 = vor.u32 %v2140_v51, %v2023_v50  ;;  %v2028_v55 = vor.u32 %v2139_v52, %v2025_v53  ;;  %v2145_v56 = vld [vmem:[%s2711_s10 + $0x34] sm:$0xf]  ;;  %v2015_v57 = vld [vmem:[%s2711_s10 + $0x30] sm:$0xf]  ;;  %v2017_v58 = vld [vmem:[%s2711_s10 + $0x38] sm:$0xf0] }
 0x1b0   : > { %842 = vmatpush.bf16.msra.mxu0 %v2032_v48  ;;  %931 = vmatpush.bf16.msra.mxu1 %v2036_v49  ;;  %v2146_v59 = vld [vmem:[%s2711_s10 + $0x34] sm:$0xf0]  ;;  %v2020_v61 = vor.u32 %v2145_v56, %v2017_v58 }
 0x1b1   : > { %v2016_v60 = vor.u32 %v2146_v59, %v2015_v57 }
 0x1b4   : > { %843 = vmatpush.bf16.msra.mxu0 %v2024_v54  ;;  %932 = vmatpush.bf16.msra.mxu1 %v2028_v55 }
 0x1bf   : > { %744 = vxpose.binary.xlu0.c.b16.end [2/4] (short) %v2020_v61, %v2016_v60, 128 }
 0x25b   : > { %v751_v62 = vpop.trf.xlu0 }
 0x25c   : > { %2037 = vmatmul.msk.bf16.vlgmr.msra.gmra.mxu0 %vm787_vm9, %v751_v62  ;;  %2053 = vmatmul.msk.bf16.vlgmr.msra.gmra.mxu1 %vm787_vm9, %v751_v62 }
 0x263   : > { %v752_v63 = vpop.trf.xlu0 }
 0x26b   : > { %v753_v0 = vpop.trf.xlu0 }
 0x26c   : > { %2038 = vmatmul.msk.bf16.gmra.mxu0 %vm787_vm9, %v753_v0  ;;  %2054 = vmatmul.msk.bf16.gmra.mxu1 %vm787_vm9, %v753_v0 }
 0x273   : > { %v754_v1 = vpop.trf.xlu0 }
 0x27b   : > { %v755_v2 = vpop.trf.xlu0 }
 0x27c   : > { %2039 = vmatmul.msk.bf16.gmra.mxu0 %vm787_vm9, %v755_v2  ;;  %2055 = vmatmul.msk.bf16.gmra.mxu1 %vm787_vm9, %v755_v2 }
 0x283   : > { %v756_v3 = vpop.trf.xlu0 }
 0x28b   : > { %v757_v4 = vpop.trf.xlu0 }
 0x28c   : > { %2040 = vmatmul.msk.bf16.gmra.mxu0 %vm787_vm9, %v757_v4  ;;  %2056 = vmatmul.msk.bf16.gmra.mxu1 %vm787_vm9, %v757_v4 }
 0x293   : > { %v758_v5 = vpop.trf.xlu0 }
 0x29b   : > { %v759_v6 = vpop.trf.xlu0 }
 0x29c   : > { %2041 = vmatmul.msk.bf16.gmra.mxu0 %vm787_vm9, %v759_v6  ;;  %2057 = vmatmul.msk.bf16.gmra.mxu1 %vm787_vm9, %v759_v6 }
 0x2a3   : > { %v760_v7 = vpop.trf.xlu0 }
 0x2ab   : > { %v761_v8 = vpop.trf.xlu0 }
 0x2ac   : > { %2042 = vmatmul.msk.bf16.gmra.mxu0 %vm787_vm9, %v761_v8  ;;  %2058 = vmatmul.msk.bf16.gmra.mxu1 %vm787_vm9, %v761_v8 }
 0x2b3   : > { %v762_v9 = vpop.trf.xlu0 }
 0x2bb   : > { %v763_v10 = vpop.trf.xlu0 }
 0x2bc   : > { %2043 = vmatmul.msk.bf16.gmra.mxu0 %vm787_vm9, %v763_v10  ;;  %2059 = vmatmul.msk.bf16.gmra.mxu1 %vm787_vm9, %v763_v10 }
 0x2c3   : > { %v764_v11 = vpop.trf.xlu0 }
 0x2cb   : > { %v765_v12 = vpop.trf.xlu0 }
 0x2cc   : > { %2044 = vmatmul.msk.bf16.gmra.mxu0 %vm787_vm9, %v765_v12  ;;  %2060 = vmatmul.msk.bf16.gmra.mxu1 %vm787_vm9, %v765_v12 }
 0x2d3   : > { %v766_v40 = vpop.trf.xlu0 }
 0x2d9   : > { %v2745_v13 = vpop.f32.mrf.mxu0  ;;  %v2747_v14 = vpop.f32.mrf.mxu1 }
 0x2da   : > { %3441 = vst [vmem:[#allocation3_spill] sm:$0xff] %v2747_v14 }
 0x2dc   : > { %2045 = vmatmul.msk.bf16.gmra.mxu0 %vm787_vm9, %v752_v63  ;;  %2061 = vmatmul.msk.bf16.gmra.mxu1 %vm787_vm9, %v752_v63 }
 0x2e1   : > { %v2751_v15 = vpop.f32.mrf.mxu0  ;;  %v2753_v16 = vpop.f32.mrf.mxu1 }
 0x2e2   : > { %3442 = vst [vmem:[#allocation4_spill] sm:$0xff] %v2751_v15 }
 0x2e3   : > { %3443 = vst [vmem:[#allocation5_spill] sm:$0xff] %v2753_v16 }
 0x2e9   : > { %v2755_v17 = vpop.f32.mrf.mxu0  ;;  %v2757_v18 = vpop.f32.mrf.mxu1 }
 0x2ea   : > { %3444 = vst [vmem:[#allocation6_spill] sm:$0xff] %v2755_v17 }
 0x2ec   : > { %2046 = vmatmul.msk.bf16.gmra.mxu0 %vm787_vm9, %v754_v1  ;;  %2062 = vmatmul.msk.bf16.gmra.mxu1 %vm787_vm9, %v754_v1 }
 0x2f1   : > { %v2761_v19 = vpop.f32.mrf.mxu0  ;;  %v2763_v20 = vpop.f32.mrf.mxu1 }
 0x2f2   : > { %3445 = vst [vmem:[#allocation7_spill] sm:$0xff] %v2761_v19  ;;  %v1015_v6 = vmax.f32 %v2751_v15, %v2761_v19 }
 0x2f3   : > { %3446 = vst [vmem:[#allocation8_spill] sm:$0xff] %v2763_v20 }
 0x2f9   : > { %v2765_v21 = vpop.f32.mrf.mxu0  ;;  %v2767_v22 = vpop.f32.mrf.mxu1 }
 0x2fa   : > { %3447 = vst [vmem:[#allocation9_spill] sm:$0xff] %v2765_v21 }
 0x2fc   : > { %2047 = vmatmul.msk.bf16.gmra.mxu0 %vm787_vm9, %v756_v3  ;;  %2063 = vmatmul.msk.bf16.gmra.mxu1 %vm787_vm9, %v756_v3 }
 0x301   : > { %v2771_v23 = vpop.f32.mrf.mxu0  ;;  %v2773_v24 = vpop.f32.mrf.mxu1 }
 0x302   : > { %3448 = vst [vmem:[#allocation10_spill] sm:$0xff] %v2771_v23  ;;  %v1017_v8 = vmax.f32 %v1015_v6, %v2771_v23 }
 0x309   : > { %v2775_v25 = vpop.f32.mrf.mxu0  ;;  %v2777_v26 = vpop.f32.mrf.mxu1 }
 0x30c   : > { %2048 = vmatmul.msk.bf16.gmra.mxu0 %vm787_vm9, %v758_v5  ;;  %2064 = vmatmul.msk.bf16.gmra.mxu1 %vm787_vm9, %v758_v5 }
 0x311   : > { %v2781_v27 = vpop.f32.mrf.mxu0  ;;  %v2783_v28 = vpop.f32.mrf.mxu1 }
 0x312   : > { %v1019_v10 = vmax.f32 %v1017_v8, %v2781_v27 }
 0x319   : > { %v2785_v29 = vpop.f32.mrf.mxu0  ;;  %v2787_v30 = vpop.f32.mrf.mxu1 }
 0x31c   : > { %2049 = vmatmul.msk.bf16.gmra.mxu0 %vm787_vm9, %v760_v7  ;;  %2065 = vmatmul.msk.bf16.gmra.mxu1 %vm787_vm9, %v760_v7  ;;  %v1014_v7 = vmax.f32 %v2745_v13, %v2755_v17 }
 0x321   : > { %v2791_v31 = vpop.f32.mrf.mxu0  ;;  %v2793_v32 = vpop.f32.mrf.mxu1 }
 0x329   : > { %v2795_v33 = vpop.f32.mrf.mxu0  ;;  %v2797_v34 = vpop.f32.mrf.mxu1 }
 0x32c   : > { %2050 = vmatmul.msk.bf16.gmra.mxu0 %vm787_vm9, %v762_v9  ;;  %2066 = vmatmul.msk.bf16.gmra.mxu1 %vm787_vm9, %v762_v9  ;;  %v1016_v9 = vmax.f32 %v1014_v7, %v2765_v21 }
 0x32e   : > { %v1018_v12 = vmax.f32 %v1016_v9, %v2775_v25 }
 0x331   : > { %v2801_v35 = vpop.f32.mrf.mxu0  ;;  %v2803_v36 = vpop.f32.mrf.mxu1 }
 0x339   : > { %v2805_v37 = vpop.f32.mrf.mxu0  ;;  %v2809_v38 = vpop.f32.mrf.mxu1 }
 0x33c   : > { %2051 = vmatmul.msk.bf16.gmra.mxu0 %vm787_vm9, %v764_v11  ;;  %2067 = vmatmul.msk.bf16.gmra.mxu1 %vm787_vm9, %v764_v11 }
 0x341   : > { %v2811_v39 = vpop.f32.mrf.mxu0  ;;  %v2813_v41 = vpop.f32.mrf.mxu1 }
 0x349   : > { %v2815_v42 = vpop.f32.mrf.mxu0  ;;  %v2821_v44 = vpop.f32.mrf.mxu1 }
 0x34c   : > { %2052 = vmatmul.msk.bf16.gmra.mxu0 %vm787_vm9, %v766_v40  ;;  %2068 = vmatmul.msk.bf16.gmra.mxu1 %vm787_vm9, %v766_v40  ;;  %v1021_v40 = vmax.f32 %v1019_v10, %v2791_v31 }
 0x351   : > { %v2819_v43 = vpop.f32.mrf.mxu0  ;;  %v2825_v46 = vpop.f32.mrf.mxu1 }
 0x359   : > { %v2823_v45 = vpop.f32.mrf.mxu0  ;;  %v2829_v48 = vpop.f32.mrf.mxu1 }
 0x35a   : > { %3449 = vst [vmem:[#allocation11_spill] sm:$0xff] %v2823_v45 }
 0x35b   : > { %3451 = vst [vmem:[#allocation13_spill] sm:$0xff] %v2829_v48 }
 0x361   : > { %v2827_v47 = vpop.f32.mrf.mxu0  ;;  %v2833_v50 = vpop.f32.mrf.mxu1 }
 0x362   : > { %3450 = vst [vmem:[#allocation12_spill] sm:$0xff] %v2827_v47 }
 0x363   : > { %3453 = vst [vmem:[#allocation15_spill] sm:$0xff] %v2833_v50 }
 0x369   : > { %v2831_v49 = vpop.f32.mrf.mxu0  ;;  %v2839_v53 = vpop.f32.mrf.mxu1 }
 0x36a   : > { %3452 = vst [vmem:[#allocation14_spill] sm:$0xff] %v2831_v49 }
 0x371   : > { %v2835_v51 = vpop.f32.mrf.mxu0  ;;  %v2843_v55 = vpop.f32.mrf.mxu1 }
 0x372   : > { %3454 = vst [vmem:[#allocation16_spill] sm:$0xff] %v2835_v51 }
 0x373   : > { %3455 = vst [vmem:[#allocation17_spill] sm:$0xff] %v2843_v55 }
 0x379   : > { %v2837_v52 = vpop.f32.mrf.mxu0  ;;  %v2847_v57 = vpop.f32.mrf.mxu1 }
 0x381   : > { %v2841_v54 = vpop.f32.mrf.mxu0  ;;  %v2851_v59 = vpop.f32.mrf.mxu1 }
 0x389   : > { %v2845_v56 = vpop.f32.mrf.mxu0  ;;  %v2855_v61 = vpop.f32.mrf.mxu1 }
 0x391   : > { %v2849_v58 = vpop.f32.mrf.mxu0  ;;  %v2859_v63 = vpop.f32.mrf.mxu1 }
 0x399   : > { %v2853_v60 = vpop.f32.mrf.mxu0  ;;  %v2863_v1 = vpop.f32.mrf.mxu1 }
 0x39a   : > { %3456 = vst [vmem:[#allocation18_spill] sm:$0xff] %v2863_v1  ;;  %v1023_v1 = vmax.f32 %v1021_v40, %v2801_v35 }
 0x39c   : > { %v1025_v6 = vmax.f32 %v1023_v1, %v2811_v39 }
 0x39e   : > { %v1027_v8 = vmax.f32 %v1025_v6, %v2819_v43 }
 0x3a0   : > { %v1029_v9 = vmax.f32 %v1027_v8, %v2827_v47  ;;  %v1052_v8 = vmax.f32 %v2753_v16, %v2763_v20 }
 0x3a1   : > { %v2857_v62 = vpop.f32.mrf.mxu0  ;;  %v2867_v3 = vpop.f32.mrf.mxu1 }
 0x3a9   : > { %v2861_v0 = vpop.f32.mrf.mxu0  ;;  %v2871_v5 = vpop.f32.mrf.mxu1 }
 0x3aa   : > { %3457 = vst [vmem:[#allocation19_spill] sm:$0xff] %v2871_v5  ;;  %v1020_v5 = vmax.f32 %v1018_v12, %v2785_v29  ;;  %v1031_v12 = vmax.f32 %v1029_v9, %v2835_v51 }
 0x3ac   : > { %v1022_v17 = vmax.f32 %v1020_v5, %v2795_v33  ;;  %v1033_v5 = vmax.f32 %v1031_v12, %v2841_v54  ;;  %v1054_v12 = vmax.f32 %v1052_v8, %v2773_v24 }
 0x3ae   : > { %v1024_v7 = vmax.f32 %v1022_v17, %v2805_v37  ;;  %v1035_v1 = vmax.f32 %v1033_v5, %v2849_v58 }
 0x3b0   : > { %v1026_v23 = vmax.f32 %v1024_v7, %v2815_v42  ;;  %v1037_v7 = vmax.f32 %v1035_v1, %v2857_v62  ;;  %v1056_v1 = vmax.f32 %v1054_v12, %v2783_v28 }
 0x3b1   : > { %v2865_v2 = vpop.f32.mrf.mxu0  ;;  %v2886_v19 = vpop.f32.mrf.mxu1 }
 0x3b2   : > { %v1028_v10 = vmax.f32 %v1026_v23, %v2823_v45  ;;  %v1039_v9 = vmax.f32 %v1037_v7, %v2865_v2  ;;  %v1058_v8 = vmax.f32 %v1056_v1, %v2793_v32 }
 0x3b4   : > { %v1030_v40 = vmax.f32 %v1028_v10, %v2831_v49  ;;  %v1051_v10 = vmax.f32 %v2747_v14, %v2757_v18 }
 0x3b6   : > { %v1032_v17 = vmax.f32 %v1030_v40, %v2837_v52 }
 0x3b8   : > { %v1034_v6 = vmax.f32 %v1032_v17, %v2845_v56  ;;  %v1053_v17 = vmax.f32 %v1051_v10, %v2767_v22 }
 0x3b9   : > { %v2869_v4 = vpop.f32.mrf.mxu0  ;;  %v2900_v15 = vpop.f32.mrf.mxu1 }
 0x3ba   : > { %v1036_v23 = vmax.f32 %v1034_v6, %v2853_v60  ;;  %v1055_v16 = vmax.f32 %v1053_v17, %v2777_v26 }
 0x3bc   : > { %v1038_v40 = vmax.f32 %v1036_v23, %v2861_v0  ;;  %v1057_v23 = vmax.f32 %v1055_v16, %v2787_v30 }
 0x3be   : > { %v1040_v45 = vmax.f32 %v1038_v40, %v2869_v4  ;;  %v1059_v10 = vmax.f32 %v1057_v23, %v2797_v34 }
 0x3c0   : > { %v1061_v40 = vmax.f32 %v1059_v10, %v2809_v38 }
 0x3c1   : > { %v2880_v11 = vpop.f32.mrf.mxu0  ;;  %v2920_v6 = vpop.f32.mrf.mxu1 }
 0x3c2   : > { %v1041_v5 = vmax.f32 %v1039_v9, %v2880_v11  ;;  %v1060_v9 = vmax.f32 %v1058_v8, %v2803_v36  ;;  %v1063_v17 = vmax.f32 %v1061_v40, %v2821_v44  ;;  %v3458_v40 = vld [vmem:[#allocation18_spill] sm:$0xff] }
 0x3c4   : > { %v1062_v12 = vmax.f32 %v1060_v9, %v2813_v41  ;;  %v1065_v16 = vmax.f32 %v1063_v17, %v2829_v48 }
 0x3c6   : > { %v1064_v49 = vmax.f32 %v1062_v12, %v2825_v46 }
 0x3c8   : > { %v1066_v1 = vmax.f32 %v1064_v49, %v2833_v50 }
 0x3c9   : > { %v2894_v21 = vpop.f32.mrf.mxu0  ;;  %v2934_v20 = vpop.f32.mrf.mxu1 }
 0x3ca   : > { %v1042_v14 = vmax.f32 %v1040_v45, %v2894_v21  ;;  %v1068_v45 = vmax.f32 %v1066_v1, %v2843_v55 }
 0x3cc   : > { %v1070_v8 = vmax.f32 %v1068_v45, %v2851_v59 }
 0x3ce   : > { %v1072_v9 = vmax.f32 %v1070_v8, %v2859_v63 }
 0x3d0   : > { %v1074_v49 = vmax.f32 %v1072_v9, %v2867_v3 }
 0x3d1   : > { %v2913_v47 = vpop.f32.mrf.mxu0  ;;  %v2946_v1 = vpop.f32.mrf.mxu1 }
 0x3d2   : > { %v1043_v7 = vmax.f32 %v1041_v5, %v2913_v47  ;;  %v1076_v17 = vmax.f32 %v1074_v49, %v2886_v19 }
 0x3d4   : > { %v1044_v51 = vmax.f32 %v1042_v14, %v1043_v7  ;;  %v1067_v7 = vmax.f32 %v1065_v16, %v2839_v53  ;;  %v1078_v16 = vmax.f32 %v1076_v17, %v2920_v6 }
 0x3d6   : > { %v1045_v5 = vrot.slane %v1044_v51, 4  ;;  %v1069_v23 = vmax.f32 %v1067_v7, %v2847_v57  ;;  %v1080_v7 = vmax.f32 %v1078_v16, %v2946_v1 }
 0x3d8   : > { %v1046_v14 = vmax.f32 %v1044_v51, %v1045_v5  ;;  %v1071_v12 = vmax.f32 %v1069_v23, %v2855_v61  ;;  %v3459_v51 = vld [vmem:[#allocation19_spill] sm:$0xff] }
 0x3da   : > { %v1047_v10 = vrot.slane %v1046_v14, 2  ;;  %v1073_v50 = vmax.f32 %v1071_v12, %v3458_v40 }
 0x3dc   : > { %v1048_v48 = vmax.f32 %v1046_v14, %v1047_v10  ;;  %v1075_v5 = vmax.f32 %v1073_v50, %v3459_v51 }
 0x3de   : > { %v1077_v45 = vmax.f32 %v1075_v5, %v2900_v15  ;;  %v1049_v8 = vrot.slane %v1048_v48, 1 }
 0x3e0   : > { %v1079_v23 = vmax.f32 %v1077_v45, %v2934_v20  ;;  %v2953_v9 = vmax.f32 %v1048_v48, %v1049_v8 }
 0x3e2   : > { %v1081_v55 = vmax.f32 %v1079_v23, %v1080_v7  ;;  %v1116_v14 = vsub.f32 %v2815_v42, %v2953_v9  ;;  %v1118_v10 = vsub.f32 %v2819_v43, %v2953_v9  ;;  %v1112_v50 = vsub.f32 %v2805_v37, %v2953_v9 }
 0x3e3   : > { %v1114_v17 = vsub.f32 %v2811_v39, %v2953_v9  ;;  %v1108_v48 = vsub.f32 %v2795_v33, %v2953_v9  ;;  %v1110_v42 = vsub.f32 %v2801_v35, %v2953_v9  ;;  %v1104_v37 = vsub.f32 %v2785_v29, %v2953_v9 }
 0x3e4   : > { %v1082_v12 = vrot.slane %v1081_v55, 4  ;;  %v1208_v5 = vmul.f32 1.442695, %v1116_v14  ;;  %v1212_v16 = vmul.f32 1.442695, %v1118_v10  ;;  %v1106_v39 = vsub.f32 %v2791_v31, %v2953_v9 }
 0x3e5   : > { %v1200_v7 = vmul.f32 1.442695, %v1112_v50  ;;  %v1204_v8 = vmul.f32 1.442695, %v1114_v17  ;;  %v1196_v23 = vmul.f32 1.442695, %v1110_v42  ;;  %v1100_v35 = vsub.f32 %v2775_v25, %v2953_v9 }
 0x3e6   : > { %v1083_v49 = vmax.f32 %v1081_v55, %v1082_v12  ;;  %2257 = vpow2.f32 %v1208_v5  ;;  %v1192_v55 = vmul.f32 1.442695, %v1108_v48  ;;  %v1150_v12 = vsub.f32 %v2913_v47, %v2953_v9  ;;  %v3460_v47 = vld [vmem:[#allocation4_spill] sm:$0xff]  ;;  %v3461_v25 = vld [vmem:[#allocation9_spill] sm:$0xff] }
 0x3e7   : > { %2259 = vpow2.f32 %v1212_v16  ;;  %v1184_v10 = vmul.f32 1.442695, %v1104_v37  ;;  %v1102_v29 = vsub.f32 %v2781_v27, %v2953_v9  ;;  %v1088_v31 = vsub.f32 %v2745_v13, %v2953_v9  ;;  %v3462_v27 = vld [vmem:[#allocation10_spill] sm:$0xff] }
 0x3e8   : > { %v1084_v45 = vrot.slane %v1083_v49, 2  ;;  %2261 = vpow2.f32 %v1200_v7  ;;  %v1276_v48 = vmul.f32 1.442695, %v1150_v12  ;;  %v1096_v7 = vsub.f32 %v3461_v25, %v2953_v9 }
 0x3e9   : > { %2263 = vpow2.f32 %v1204_v8  ;;  %v1176_v8 = vmul.f32 1.442695, %v1100_v35  ;;  %v1098_v37 = vsub.f32 %v3462_v27, %v2953_v9 }
 0x3ea   : > { %v1085_v43 = vmax.f32 %v1083_v49, %v1084_v45  ;;  %2265 = vpow2.f32 %v1192_v55  ;;  %v1188_v49 = vmul.f32 1.442695, %v1106_v39  ;;  %v1090_v45 = vsub.f32 %v3460_v47, %v2953_v9  ;;  %v3463_v39 = vld [vmem:[#allocation6_spill] sm:$0xff]  ;;  %v3464_v47 = vld [vmem:[#allocation7_spill] sm:$0xff] }
 0x3eb   : > { %2267 = vpow2.f32 %v1196_v23  ;;  %v1180_v55 = vmul.f32 1.442695, %v1102_v29  ;;  %v1092_v23 = vsub.f32 %v3463_v39, %v2953_v9  ;;  %v1140_v29 = vsub.f32 %v2861_v0, %v2953_v9 }
 0x3ec   : > { %v2258_v33 = vpop.eup %2257  ;;  %v1086_v14 = vrot.slane %v1085_v43, 1  ;;  %2269 = vpow2.f32 %v1184_v10  ;;  %v1168_v10 = vmul.f32 1.442695, %v1096_v7 }
 0x3ed   : > { %v2260_v50 = vpop.eup %2259  ;;  %2271 = vpow2.f32 %v1188_v49  ;;  %v1172_v49 = vmul.f32 1.442695, %v1098_v37 }
 0x3ee   : > { %v2262_v17 = vpop.eup %2261  ;;  %v1294_v5 = vpack.c.bf16 %v2260_v50, %v2258_v33  ;;  %v2983_v42 = vmax.f32 %v1085_v43, %v1086_v14  ;;  %v1152_v33 = vmul.f32 1.442695, %v1088_v31  ;;  %2273 = vpow2.f32 %v1276_v48 }
 0x3ef   : > { %v2264_v16 = vpop.eup %2263  ;;  %v1094_v43 = vsub.f32 %v3464_v47, %v2953_v9  ;;  %v1156_v14 = vmul.f32 1.442695, %v1090_v45  ;;  %2275 = vpow2.f32 %v1176_v8  ;;  %v1160_v31 = vmul.f32 1.442695, %v1092_v23 }
 0x3f0   : > { %1342 = vmatpush.bf16.msra.mxu2 %v1294_v5  ;;  %v2266_v13 = vpop.eup %2265  ;;  %v1292_v12 = vpack.c.bf16 %v2264_v16, %v2262_v17  ;;  %v1113_v35 = vsub.f32 %v2809_v38, %v2983_v42  ;;  %2277 = vpow2.f32 %v1180_v55  ;;  %v1117_v17 = vsub.f32 %v2821_v44, %v2983_v42 }
 0x3f1   : > { %v2268_v50 = vpop.eup %2267  ;;  %2279 = vpow2.f32 %v1152_v33  ;;  %v1142_v45 = vsub.f32 %v2865_v2, %v2953_v9  ;;  %v1164_v38 = vmul.f32 1.442695, %v1094_v43  ;;  %v1119_v25 = vsub.f32 %v2825_v46, %v2983_v42 }
 0x3f2   : > { %v2270_v5 = vpop.eup %2269  ;;  %v1290_v16 = vpack.c.bf16 %v2268_v50, %v2266_v13  ;;  %2281 = vpow2.f32 %v1156_v14  ;;  %v1202_v0 = vmul.f32 1.442695, %v1113_v35  ;;  %v1144_v44 = vsub.f32 %v2869_v4, %v2953_v9 }
 0x3f3   : > { %v2272_v48 = vpop.eup %2271  ;;  %2283 = vpow2.f32 %v1168_v10  ;;  %v1256_v8 = vmul.f32 1.442695, %v1140_v29  ;;  %v1145_v37 = vsub.f32 %v2900_v15, %v2983_v42  ;;  %v1210_v2 = vmul.f32 1.442695, %v1117_v17 }
 0x3f4   : > { %1343 = vmatpush.bf16.msra.mxu2 %v1292_v12  ;;  %v3001_v7 = vpop.eup %2273  ;;  %2285 = vpow2.f32 %v1172_v49  ;;  %v1288_v55 = vpack.c.bf16 %v2272_v48, %v2270_v5  ;;  %v1146_v46 = vsub.f32 %v2880_v11, %v2953_v9  ;;  %v1260_v39 = vmul.f32 1.442695, %v1142_v45 }
 0x3f5   : > { %v2276_v27 = vpop.eup %2275  ;;  %2287 = vpow2.f32 %v1160_v31  ;;  %v1147_v4 = vsub.f32 %v2920_v6, %v2983_v42  ;;  %v1214_v33 = vmul.f32 1.442695, %v1119_v25  ;;  %v1148_v15 = vsub.f32 %v2894_v21, %v2953_v9 }
 0x3f6   : > { %v2278_v13 = vpop.eup %2277  ;;  %2289 = vpow2.f32 %v1164_v38  ;;  %v1264_v50 = vmul.f32 1.442695, %v1144_v44  ;;  %v1115_v11 = vsub.f32 %v2813_v41, %v2983_v42  ;;  %v1266_v43 = vmul.f32 1.442695, %v1145_v37 }
 0x3f7   : > { %v3009_v23 = vpop.eup %2279  ;;  %2291 = vpow2.f32 %v1202_v0  ;;  %v1286_v14 = vpack.c.bf16 %v2278_v13, %v2276_v27  ;;  %v1268_v10 = vmul.f32 1.442695, %v1146_v46  ;;  %v1270_v29 = vmul.f32 1.442695, %v1147_v4 }
 0x3f8   : > { %1344 = vmatpush.bf16.msra.mxu2 %v1290_v16  ;;  %v3013_v12 = vpop.eup %2281  ;;  %2293 = vpow2.f32 %v1256_v8  ;;  %v1109_v21 = vsub.f32 %v2797_v34, %v2983_v42  ;;  %v1272_v5 = vmul.f32 1.442695, %v1148_v15  ;;  %v1111_v41 = vsub.f32 %v2803_v36, %v2983_v42 }
 0x3f9   : > { %v2284_v47 = vpop.eup %2283  ;;  %2295 = vpow2.f32 %v1210_v2  ;;  %v1206_v31 = vmul.f32 1.442695, %v1115_v11  ;;  %v1151_v45 = vsub.f32 %v2946_v1, %v2983_v42  ;;  %v1105_v34 = vsub.f32 %v2787_v30, %v2983_v42 }
 0x3fa   : > { %v2286_v35 = vpop.eup %2285  ;;  %2297 = vpow2.f32 %v1260_v39  ;;  %v1136_v36 = vsub.f32 %v2853_v60, %v2953_v9  ;;  %v1107_v0 = vsub.f32 %v2793_v32, %v2983_v42  ;;  %v1194_v44 = vmul.f32 1.442695, %v1109_v21 }
 0x3fb   : > { %v2288_v6 = vpop.eup %2287  ;;  %2299 = vpow2.f32 %v1214_v33  ;;  %v1284_v16 = vpack.c.bf16 %v2286_v35, %v2284_v47  ;;  %v1198_v27 = vmul.f32 1.442695, %v1111_v41  ;;  %v1138_v2 = vsub.f32 %v2857_v62, %v2953_v9  ;;  %v2148_v35 = vld [vmem:[%s2711_s10 + $0x44] sm:$0xf0] }
 0x3fc   : > { %1345 = vmatpush.bf16.msra.mxu2 %v1288_v55  ;;  %v2290_v49 = vpop.eup %2289  ;;  %2301 = vpow2.f32 %v1264_v50  ;;  %v1278_v55 = vmul.f32 1.442695, %v1151_v45  ;;  %v1132_v60 = vsub.f32 %v2845_v56, %v2953_v9  ;;  %v1134_v32 = vsub.f32 %v2849_v58, %v2953_v9 }
 0x3fd   : > { %v3021_v17 = vpop.eup %2291  ;;  %2303 = vpow2.f32 %v1266_v43  ;;  %v1282_v37 = vpack.c.bf16 %v2290_v49, %v2288_v6  ;;  %v1101_v46 = vsub.f32 %v2777_v26, %v2983_v42  ;;  %v1186_v39 = vmul.f32 1.442695, %v1105_v34 }
 0x3fe   : > { %v3025_v48 = vpop.eup %2293  ;;  %2305 = vpow2.f32 %v1268_v10  ;;  %v1097_v62 = vsub.f32 %v2767_v22, %v2983_v42  ;;  %v1103_v33 = vsub.f32 %v2783_v28, %v2983_v42  ;;  %v1190_v15 = vmul.f32 1.442695, %v1107_v0  ;;  %v3466_v0 = vld [vmem:[#allocation14_spill] sm:$0xff] }
 0x3ff   : > { %v2296_v38 = vpop.eup %2295  ;;  %2307 = vpow2.f32 %v1270_v29  ;;  %v1248_v50 = vmul.f32 1.442695, %v1136_v36  ;;  %v1280_v26 = vpack.c.bf16 %v3013_v12, %v3009_v23  ;;  %v1252_v11 = vmul.f32 1.442695, %v1138_v2 }
 0x400   : > { %1346 = vmatpush.bf16.msra.mxu2 %v1286_v14  ;;  %v3031_v25 = vpop.eup %2297  ;;  %2309 = vpow2.f32 %v1272_v5  ;;  %v2071_v14 = vld [vmem:[%s2711_s10 + $0x40] sm:$0xf]  ;;  %v1178_v10 = vmul.f32 1.442695, %v1101_v46  ;;  %v1099_v23 = vsub.f32 %v2773_v24, %v2983_v42  ;;  %v1182_v12 = vmul.f32 1.442695, %v1103_v33 }
 0x401   : > { %v2300_v8 = vpop.eup %2299  ;;  %2311 = vpow2.f32 %v1206_v31  ;;  %v1306_v1 = vpack.c.bf16 %v3031_v25, %v3025_v48  ;;  %v3062_v29 = vor.u32 %v2148_v35, %v2071_v14  ;;  %v1128_v49 = vsub.f32 %v2837_v52, %v2953_v9 }
 0x402   : > { %v2302_v30 = vpop.eup %2301  ;;  %2313 = vpow2.f32 %v1194_v44  ;;  %v1295_v43 = vpack.c.bf16 %v2300_v8, %v2296_v38  ;;  %v1240_v21 = vmul.f32 1.442695, %v1132_v60  ;;  %v1130_v41 = vsub.f32 %v2841_v54, %v2953_v9  ;;  %v3465_v38 = vld [vmem:[#allocation8_spill] sm:$0xff] }
 0x403   : > { %v3041_v13 = vpop.eup %2303  ;;  %2315 = vpow2.f32 %v1198_v27  ;;  %v1170_v45 = vmul.f32 1.442695, %v1097_v62  ;;  %v1095_v34 = vsub.f32 %v3465_v38, %v2983_v42  ;;  %v1174_v36 = vmul.f32 1.442695, %v1099_v23 }
 0x404   : > { %1347 = vmatpush.bf16.msra.mxu2 %v1284_v16  ;;  %v2306_v4 = vpop.eup %2305  ;;  %2317 = vpow2.f32 %v1278_v55  ;;  %v1093_v16 = vsub.f32 %v2757_v18, %v2983_v42  ;;  %v1124_v44 = vsub.f32 %v3466_v0, %v2953_v9  ;;  %v1232_v8 = vmul.f32 1.442695, %v1128_v49  ;;  %v3467_v18 = vld [vmem:[#allocation16_spill] sm:$0xff]  ;;  %v3468_v55 = vld [vmem:[#allocation3_spill] sm:$0xff] }
 0x405   : > { %v3053_v56 = vpop.eup %2307  ;;  %v1308_v58 = vpack.c.bf16 %v2306_v4, %v2302_v30  ;;  %2319 = vpow2.f32 %v1186_v39  ;;  %v1126_v27 = vsub.f32 %v3467_v18, %v2953_v9  ;;  %v1089_v60 = vsub.f32 %v3468_v55, %v2983_v42  ;;  %v3469_v39 = vld [vmem:[#allocation5_spill] sm:$0xff] }
 0x406   : > { %v2310_v47 = vpop.eup %2309  ;;  %v1309_v22 = vpack.c.bf16 %v3053_v56, %v3041_v13  ;;  %2321 = vpow2.f32 %v1190_v15  ;;  %v1091_v4 = vsub.f32 %v3469_v39, %v2983_v42  ;;  %v1166_v62 = vmul.f32 1.442695, %v1095_v34  ;;  %v3470_v15 = vld [vmem:[#allocation11_spill] sm:$0xff] }
 0x407   : > { %v2312_v28 = vpop.eup %2311  ;;  %v1310_v6 = vpack.c.bf16 %v3001_v7, %v2310_v47  ;;  %2323 = vpow2.f32 %v1248_v50  ;;  %v1244_v7 = vmul.f32 1.442695, %v1134_v32  ;;  %v1162_v32 = vmul.f32 1.442695, %v1093_v16  ;;  %v3471_v47 = vld [vmem:[#allocation12_spill] sm:$0xff]  ;;  %v3474_v13 = vld [vmem:[#allocation15_spill] sm:$0xff] }
 0x408   : > { %1348 = vmatpush.bf16.msra.mxu2 %v1282_v37  ;;  %v2314_v5 = vpop.eup %2313  ;;  %2325 = vpow2.f32 %v1252_v11  ;;  %v1293_v31 = vpack.c.bf16 %v2312_v28, %v3021_v17  ;;  %v1236_v37 = vmul.f32 1.442695, %v1130_v41  ;;  %v1120_v50 = vsub.f32 %v3470_v15, %v2953_v9  ;;  %v2087_v15 = vld [vmem:[%s2711_s10 + $0x60] sm:$0xf] }
 0x409   : > { %1365 = vmatpush.bf16.msra.mxu3 %v1310_v6  ;;  %v2316_v24 = vpop.eup %2315  ;;  %2327 = vpow2.f32 %v1178_v10  ;;  %v1122_v11 = vsub.f32 %v3471_v47, %v2953_v9  ;;  %v1149_v28 = vsub.f32 %v2934_v20, %v2983_v42  ;;  %v1154_v10 = vmul.f32 1.442695, %v1089_v60 }
 0x40a   : > { %v3074_v52 = vpop.eup %2317  ;;  %2329 = vpow2.f32 %v1182_v12  ;;  %v1291_v30 = vpack.c.bf16 %v2316_v24, %v2314_v5  ;;  %v1158_v12 = vmul.f32 1.442695, %v1091_v4  ;;  %v1216_v25 = vmul.f32 1.442695, %v1120_v50  ;;  %v2150_v5 = vld [vmem:[%s2711_s10 + $0x54] sm:$0xf0] }
 0x40b   : > { %v2320_v54 = vpop.eup %2319  ;;  %2331 = vpow2.f32 %v1240_v21  ;;  %v2079_v21 = vld [vmem:[%s2711_s10 + $0x50] sm:$0xf]  ;;  %v1274_v41 = vmul.f32 1.442695, %v1149_v28  ;;  %v1141_v38 = vsub.f32 %v3459_v51, %v2983_v42  ;;  %v1137_v51 = vsub.f32 %v3458_v40, %v2983_v42  ;;  %v2152_v50 = vld [vmem:[%s2711_s10 + $0x64] sm:$0xf0] }
 0x40c   : > { %1349 = vmatpush.bf16.msra.mxu2 %v1280_v26  ;;  %v2322_v17 = vpop.eup %2321  ;;  %2333 = vpow2.f32 %v1244_v7  ;;  %v1133_v39 = vsub.f32 %v2855_v61, %v2983_v42  ;;  %v1129_v61 = vsub.f32 %v2847_v57, %v2983_v42  ;;  %v3472_v57 = vld [vmem:[#allocation17_spill] sm:$0xff]  ;;  %v1123_v56 = vsub.f32 %v3474_v13, %v2983_v42 }
 0x40d   : > { %1366 = vmatpush.bf16.msra.mxu3 %v1308_v58  ;;  %v2324_v2 = vpop.eup %2323  ;;  %2335 = vpow2.f32 %v1170_v45  ;;  %v1224_v58 = vmul.f32 1.442695, %v1124_v44  ;;  %v1289_v14 = vpack.c.bf16 %v2322_v17, %v2320_v54  ;;  %v1143_v54 = vsub.f32 %v2886_v19, %v2983_v42 }
 0x40e   : > { %v2326_v46 = vpop.eup %2325  ;;  %2337 = vpow2.f32 %v1174_v36  ;;  %v1258_v18 = vmul.f32 1.442695, %v1141_v38  ;;  %v1250_v40 = vmul.f32 1.442695, %v1137_v51  ;;  %v1242_v47 = vmul.f32 1.442695, %v1133_v39 }
 0x40f   : > { %1350 = vmatmul.bf16.vlgmr.msra.gmra.mxu2 %v3062_v29  ;;  %v2328_v33 = vpop.eup %2327  ;;  %2339 = vpow2.f32 %v1232_v8  ;;  %v1304_v6 = vpack.c.bf16 %v2326_v46, %v2324_v2  ;;  %v1262_v2 = vmul.f32 1.442695, %v1143_v54  ;;  %v2073_v46 = vld [vmem:[%s2711_s10 + $0x48] sm:$0xf0]  ;;  %v1234_v28 = vmul.f32 1.442695, %v1129_v61 }
 0x410   : > { %1388 = vmatpush.bf16.msrb.mxu2 %v1295_v43  ;;  %v2330_v26 = vpop.eup %2329  ;;  %v1228_v43 = vmul.f32 1.442695, %v1126_v27  ;;  %2341 = vpow2.f32 %v1236_v37 }
 0x411   : > { %1367 = vmatpush.bf16.msra.mxu3 %v1306_v1  ;;  %v2332_v35 = vpop.eup %2331  ;;  %2343 = vpow2.f32 %v1162_v32  ;;  %v1220_v1 = vmul.f32 1.442695, %v1122_v11  ;;  %v1287_v49 = vpack.c.bf16 %v2330_v26, %v2328_v33  ;;  %v2147_v32 = vld [vmem:[%s2711_s10 + $0x44] sm:$0xf]  ;;  %v2088_v11 = vor.u32 %v2152_v50, %v2087_v15 }
 0x412   : > { %v2334_v23 = vpop.eup %2333  ;;  %2345 = vpow2.f32 %v1166_v62  ;;  %v1135_v62 = vsub.f32 %v2859_v63, %v2983_v42  ;;  %v3117_v26 = vor.u32 %v2147_v32, %v2073_v46  ;;  %v1131_v63 = vsub.f32 %v2851_v59, %v2983_v42 }
 0x413   : > { %v2336_v48 = vpop.eup %2335  ;;  %2347 = vpow2.f32 %v1224_v58  ;;  %v1302_v7 = vpack.c.bf16 %v2334_v23, %v2332_v35  ;;  %v1125_v35 = vsub.f32 %v2839_v53, %v2983_v42 }
 0x414   : > { %1389 = vmatpush.bf16.msrb.mxu2 %v1293_v31  ;;  %v2338_v9 = vpop.eup %2337  ;;  %2349 = vpow2.f32 %v1228_v43  ;;  %v3097_v31 = vor.u32 %v2150_v5, %v2079_v21  ;;  %v1246_v43 = vmul.f32 1.442695, %v1135_v62  ;;  %v1238_v59 = vmul.f32 1.442695, %v1131_v63  ;;  %v2149_v21 = vld [vmem:[%s2711_s10 + $0x54] sm:$0xf] }
 0x415   : > { %1368 = vmatpush.bf16.msra.mxu3 %v1304_v6  ;;  %v2340_v20 = vpop.eup %2339  ;;  %2351 = vpow2.f32 %v1154_v10  ;;  %v1285_v34 = vpack.c.bf16 %v2338_v9, %v2336_v48  ;;  %v1127_v10 = vsub.f32 %v3472_v57, %v2983_v42  ;;  %v3473_v48 = vld [vmem:[#allocation13_spill] sm:$0xff] }
 0x416   : > { %v2342_v24 = vpop.eup %2341  ;;  %2353 = vpow2.f32 %v1158_v12  ;;  %v1121_v53 = vsub.f32 %v3473_v48, %v2983_v42  ;;  %v2081_v5 = vld [vmem:[%s2711_s10 + $0x58] sm:$0xf0] }
 0x417   : > { %v2344_v16 = vpop.eup %2343  ;;  %2355 = vpow2.f32 %v1216_v25  ;;  %v1300_v0 = vpack.c.bf16 %v2342_v24, %v2340_v20  ;;  %v1226_v25 = vmul.f32 1.442695, %v1125_v35 }
 0x418   : > { %1390 = vmatpush.bf16.msrb.mxu2 %v1291_v30  ;;  %v2346_v45 = vpop.eup %2345  ;;  %2357 = vpow2.f32 %v1220_v1  ;;  %v1139_v30 = vsub.f32 %v2867_v3, %v2983_v42  ;;  %v1218_v20 = vmul.f32 1.442695, %v1121_v53  ;;  %v2153_v53 = vld [vmem:[%s2504_s5] sm:$0xff] }
 0x419   : > { %1369 = vmatpush.bf16.msra.mxu3 %v1302_v7  ;;  %v2348_v36 = vpop.eup %2347  ;;  %2359 = vpow2.f32 %v1274_v41  ;;  %v1283_v27 = vpack.c.bf16 %v2346_v45, %v2344_v16  ;;  %v1222_v41 = vmul.f32 1.442695, %v1123_v56  ;;  %v2084_v16 = vor.u32 %v2149_v21, %v2081_v5 }
 0x41a   : > { %v2350_v44 = vpop.eup %2349  ;;  %2361 = vpow2.f32 %v1258_v18  ;;  %v1254_v3 = vmul.f32 1.442695, %v1139_v30 }
 0x41b   : > { %v2352_v8 = vpop.eup %2351  ;;  %v1298_v19 = vpack.c.bf16 %v2350_v44, %v2348_v36  ;;  %2363 = vpow2.f32 %v1262_v2 }
 0x41c   : > { %1391 = vmatpush.bf16.msrb.mxu2 %v1289_v14  ;;  %v2354_v17 = vpop.eup %2353  ;;  %2365 = vpow2.f32 %v1250_v40 }
 0x41d   : > { %1370 = vmatpush.bf16.msra.mxu3 %v1300_v0  ;;  %v2356_v37 = vpop.eup %2355  ;;  %v1281_v4 = vpack.c.bf16 %v2354_v17, %v2352_v8  ;;  %2367 = vpow2.f32 %v1254_v3  ;;  %v2151_v8 = vld [vmem:[%s2711_s10 + $0x64] sm:$0xf]  ;;  %v2089_v17 = vld [vmem:[%s2711_s10 + $0x68] sm:$0xf0] }
 0x41e   : > { %v2358_v55 = vpop.eup %2357  ;;  %2369 = vpow2.f32 %v1242_v47  ;;  %v2092_v51 = vor.u32 %v2151_v8, %v2089_v17 }
 0x41f   : > { %1355 = vmatmul.bf16.gmra.mxu2 %v3097_v31  ;;  %v2360_v60 = vpop.eup %2359  ;;  %v1296_v33 = vpack.c.bf16 %v2358_v55, %v2356_v37  ;;  %2371 = vpow2.f32 %v1246_v43 }
 0x420   : > { %1392 = vmatpush.bf16.msrb.mxu2 %v1287_v49  ;;  %v1311_v58 = vpack.c.bf16 %v3074_v52, %v2360_v60  ;;  %v2362_v14 = vpop.eup %2361  ;;  %2373 = vpow2.f32 %v1234_v28 }
 0x421   : > { %1371 = vmatpush.bf16.msra.mxu3 %v1298_v19  ;;  %v2364_v52 = vpop.eup %2363  ;;  %2375 = vpow2.f32 %v1238_v59 }
 0x422   : > { %v2366_v6 = vpop.eup %2365  ;;  %v1307_v23 = vpack.c.bf16 %v2364_v52, %v2362_v14  ;;  %2377 = vpow2.f32 %v1226_v25 }
 0x423   : > { %v2368_v12 = vpop.eup %2367 }
 0x424   : > { %1393 = vmatpush.bf16.msrb.mxu2 %v1285_v34  ;;  %v2370_v9 = vpop.eup %2369  ;;  %v1305_v1 = vpack.c.bf16 %v2368_v12, %v2366_v6  ;;  %v2154_v12 = vld [vmem:[%s2504_s5 + $0x8] sm:$0xff] }
 0x425   : > { %1372 = vmatpush.bf16.msra.mxu3 %v1296_v33  ;;  %v2372_v49 = vpop.eup %2371 }
 0x426   : > { %v2374_v7 = vpop.eup %2373  ;;  %v1303_v24 = vpack.c.bf16 %v2372_v49, %v2370_v9 }
 0x427   : > { %v2376_v45 = vpop.eup %2375 }
 0x428   : > { %1394 = vmatpush.bf16.msrb.mxu2 %v1283_v27  ;;  %1373 = vmatmul.bf16.vlgmr.msra.gmra.mxu3 %v3117_v26  ;;  %v2378_v42 = vpop.eup %2377  ;;  %v1301_v38 = vpack.c.bf16 %v2376_v45, %v2374_v7 }
 0x429   : > { %1411 = vmatpush.bf16.msrb.mxu3 %v1311_v58 }
 0x42c   : > { %1395 = vmatpush.bf16.msrb.mxu2 %v1281_v4 }
 0x42d   : > { %1412 = vmatpush.bf16.msrb.mxu3 %v1309_v22  ;;  %v1230_v22 = vmul.f32 1.442695, %v1127_v10 }
 0x42f   : > { %1360 = vmatmul.bf16.gmra.mxu2 %v2088_v11  ;;  %2379 = vpow2.f32 %v1230_v22 }
 0x430   : > { %2381 = vpow2.f32 %v1218_v20  ;;  %1544 = vmatpush.bf16.msra.mxu2 %v2154_v12 }
 0x431   : > { %1413 = vmatpush.bf16.msrb.mxu3 %v1307_v23  ;;  %2383 = vpow2.f32 %v1222_v41 }
 0x434   : > { %1545 = vmatpush.bf16.msra.mxu2 %v2153_v53 }
 0x435   : > { %1414 = vmatpush.bf16.msrb.mxu3 %v1305_v1  ;;  %v2380_v34 = vpop.eup %2379 }
 0x436   : > { %v2382_v36 = vpop.eup %2381  ;;  %v1299_v54 = vpack.c.bf16 %v2380_v34, %v2378_v42 }
 0x437   : > { %v2384_v0 = vpop.eup %2383 }
 0x438   : > { %1378 = vmatmul.bf16.gmra.mxu3 %v2084_v16  ;;  %v1297_v44 = vpack.c.bf16 %v2384_v0, %v2382_v36 }
 0x439   : > { %1415 = vmatpush.bf16.msrb.mxu3 %v1303_v24 }
 0x43d   : > { %1416 = vmatpush.bf16.msrb.mxu3 %v1301_v38 }
 0x43f   : > { %1396 = vmatmul.bf16.vlgmr.msrb.gmra.mxu2 %v3062_v29 }
 0x441   : > { %1417 = vmatpush.bf16.msrb.mxu3 %v1299_v54 }
 0x445   : > { %1418 = vmatpush.bf16.msrb.mxu3 %v1297_v44 }
 0x448   : > { %1383 = vmatmul.bf16.gmra.mxu3 %v2092_v51 }
 0x449   : > { %2165 = vmatpush.bf16.msra.mxu3 %v2154_v12 }
 0x44d   : > { %2166 = vmatpush.bf16.msra.mxu3 %v2153_v53 }
 0x44f   : > { %1401 = vmatmul.bf16.gmra.mxu2 %v3097_v31 }
 0x458   : > { %1419 = vmatmul.bf16.vlgmr.msrb.gmra.mxu3 %v3117_v26 }
 0x45f   : > { %1406 = vmatmul.bf16.gmra.mxu2 %v2088_v11 }
 0x468   : > { %1424 = vmatmul.bf16.gmra.mxu3 %v2084_v16 }
 0x478   : > { %1429 = vmatmul.bf16.gmra.mxu3 %v2092_v51 }
 0x492   : > { %v1351_v18 = vpop.f32.mrf.mxu2 }
 0x49a   : > { %v1353_v27 = vpop.f32.mrf.mxu2 }
 0x4a2   : > { %v1356_v29 = vpop.f32.mrf.mxu2 }
 0x4aa   : > { %v1358_v37 = vpop.f32.mrf.mxu2 }
 0x4ab   : > { %v1374_v30 = vpop.f32.mrf.mxu3 }
 0x4ac   : > { %v1375_v2 = vadd.f32 %v1374_v30, %v1351_v18 }
 0x4b2   : > { %v1361_v19 = vpop.f32.mrf.mxu2 }
 0x4b3   : > { %v1376_v55 = vpop.f32.mrf.mxu3 }
 0x4b4   : > { %v1377_v50 = vadd.f32 %v1376_v55, %v1353_v27 }
 0x4ba   : > { %v1363_v60 = vpop.f32.mrf.mxu2 }
 0x4bb   : > { %v1379_v32 = vpop.f32.mrf.mxu3 }
 0x4bc   : > { %v1380_v46 = vadd.f32 %v1379_v32, %v1356_v29 }
 0x4c2   : > { %v1397_v39 = vpop.f32.mrf.mxu2 }
 0x4c3   : > { %v1381_v40 = vpop.f32.mrf.mxu3 }
 0x4c4   : > { %v1382_v58 = vadd.f32 %v1381_v40, %v1358_v37 }
 0x4ca   : > { %v1399_v4 = vpop.f32.mrf.mxu2 }
 0x4cb   : > { %v1384_v31 = vpop.f32.mrf.mxu3 }
 0x4cc   : > { %v1385_v62 = vadd.f32 %v1384_v31, %v1361_v19 }
 0x4ce   : > { %2385 = vrcp.f32 %v1385_v62 }
 0x4d2   : > { %v1402_v3 = vpop.f32.mrf.mxu2 }
 0x4d3   : > { %v1386_v33 = vpop.f32.mrf.mxu3 }
 0x4d4   : > { %v2386_v15 = vpop.eup %2385 }
 0x4d5   : > { %v1436_v26 = vperm.slane %v2386_v15, 0 }
 0x4d7   : > { %v1438_v47 = vmul.f32 %v1436_v26, %v1375_v2  ;;  %v1440_v11 = vmul.f32 %v1436_v26, %v1377_v50  ;;  %v1442_v63 = vmul.f32 %v1436_v26, %v1380_v46  ;;  %v1444_v43 = vmul.f32 %v1436_v26, %v1382_v58 }
 0x4d9   : > { %v1446_v14 = vpack.c.bf16 %v1440_v11, %v1438_v47  ;;  %v1448_v52 = vpack.c.bf16 %v1444_v43, %v1442_v63 }
 0x4da   : > { %v1404_v61 = vpop.f32.mrf.mxu2 }
 0x4db   : > { %v1420_v35 = vpop.f32.mrf.mxu3 }
 0x4dc   : > { %v1421_v56 = vadd.f32 %v1420_v35, %v1397_v39 }
 0x4e2   : > { %v1407_v28 = vpop.f32.mrf.mxu2 }
 0x4e3   : > { %v1422_v57 = vpop.f32.mrf.mxu3 }
 0x4e4   : > { %v1423_v22 = vadd.f32 %v1422_v57, %v1399_v4 }
 0x4ea   : > { %v1409_v10 = vpop.f32.mrf.mxu2 }
 0x4eb   : > { %v1425_v59 = vpop.f32.mrf.mxu3 }
 0x4ec   : > { %v1426_v5 = vadd.f32 %v1425_v59, %v1402_v3 }
 0x4f3   : > { %v1427_v6 = vpop.f32.mrf.mxu3 }
 0x4f4   : > { %v1428_v20 = vadd.f32 %v1427_v6, %v1404_v61 }
 0x4fb   : > { %v1430_v23 = vpop.f32.mrf.mxu3 }
 0x4fc   : > { %v1431_v48 = vadd.f32 %v1430_v23, %v1407_v28 }
 0x4fe   : > { %2387 = vrcp.f32 %v1431_v48 }
 0x503   : > { %v1432_v25 = vpop.f32.mrf.mxu3 }
 0x504   : > { %v2388_v13 = vpop.eup %2387 }
 0x505   : > { %v1437_v9 = vperm.slane %v2388_v13, 0 }
 0x507   : > { %v1439_v1 = vmul.f32 %v1437_v9, %v1421_v56  ;;  %v1441_v49 = vmul.f32 %v1437_v9, %v1423_v22  ;;  %v1443_v41 = vmul.f32 %v1437_v9, %v1426_v5  ;;  %v1445_v7 = vmul.f32 %v1437_v9, %v1428_v20 }
 0x509   : > { %v1447_v21 = vpack.c.bf16 %v1441_v49, %v1439_v1  ;;  %v1449_v24 = vpack.c.bf16 %v1445_v7, %v1443_v41 }
 0x50b   : > { %1454 = vxpose.binary.xlu1.c.b16.start [1/4] (short) %v1447_v21, %v1446_v14, 128 }
 0x51b   : > { %1455 = vxpose.binary.xlu1.c.b16.end [2/4] (short) %v1449_v24, %v1448_v52, 128 }
 0x5b7   : > { %v1462_v16 = vpop.trf.xlu1 }
 0x5b8   : > { %2101 = vmatmul.msk.bf16.vlgmr.msra.gmra.mxu2 %vm787_vm9, %v1462_v16 }
 0x5bf   : > { %v1463_v45 = vpop.trf.xlu1 }
 0x5c7   : > { %v1464_v42 = vpop.trf.xlu1 }
 0x5c8   : > { %2102 = vmatmul.msk.bf16.gmra.mxu2 %vm787_vm9, %v1464_v42 }
 0x5cf   : > { %v1465_v38 = vpop.trf.xlu1 }
 0x5d0   : > { %2110 = vmatmul.msk.bf16.vlgmr.msra.gmra.mxu3 %vm787_vm9, %v1465_v38 }
 0x5d7   : > { %v1466_v34 = vpop.trf.xlu1 }
 0x5d8   : > { %2103 = vmatmul.msk.bf16.gmra.mxu2 %vm787_vm9, %v1466_v34 }
 0x5df   : > { %v1467_v36 = vpop.trf.xlu1 }
 0x5e0   : > { %2111 = vmatmul.msk.bf16.gmra.mxu3 %vm787_vm9, %v1467_v36 }
 0x5e7   : > { %v1468_v54 = vpop.trf.xlu1 }
 0x5e8   : > { %2104 = vmatmul.msk.bf16.gmra.mxu2 %vm787_vm9, %v1468_v54 }
 0x5ef   : > { %v1469_v0 = vpop.trf.xlu1 }
 0x5f0   : > { %2112 = vmatmul.msk.bf16.gmra.mxu3 %vm787_vm9, %v1469_v0 }
 0x5f7   : > { %v1470_v44 = vpop.trf.xlu1 }
 0x5f8   : > { %2105 = vmatmul.msk.bf16.gmra.mxu2 %vm787_vm9, %v1470_v44 }
 0x5ff   : > { %v1471_v8 = vpop.trf.xlu1 }
 0x600   : > { %2113 = vmatmul.msk.bf16.gmra.mxu3 %vm787_vm9, %v1471_v8 }
 0x607   : > { %v1472_v17 = vpop.trf.xlu1 }
 0x608   : > { %2106 = vmatmul.msk.bf16.gmra.mxu2 %vm787_vm9, %v1472_v17 }
 0x60f   : > { %v1473_v51 = vpop.trf.xlu1 }
 0x610   : > { %2114 = vmatmul.msk.bf16.gmra.mxu3 %vm787_vm9, %v1473_v51 }
 0x617   : > { %v1474_v18 = vpop.trf.xlu1 }
 0x618   : > { %2107 = vmatmul.msk.bf16.gmra.mxu2 %vm787_vm9, %v1474_v18 }
 0x61f   : > { %v1475_v27 = vpop.trf.xlu1 }
 0x620   : > { %2115 = vmatmul.msk.bf16.gmra.mxu3 %vm787_vm9, %v1475_v27 }
 0x627   : > { %v1476_v29 = vpop.trf.xlu1 }
 0x628   : > { %2108 = vmatmul.msk.bf16.gmra.mxu2 %vm787_vm9, %v1476_v29 }
 0x62f   : > { %v1477_v37 = vpop.trf.xlu1 }
 0x630   : > { %2116 = vmatmul.msk.bf16.gmra.mxu3 %vm787_vm9, %v1477_v37 }
 0x638   : > { %2109 = vmatmul.msk.bf16.gmra.mxu2 %vm787_vm9, %v1463_v45 }
 0x63b   : > { %v3160_v30 = vpop.f32.mrf.mxu2 }
 0x643   : > { %v3162_v2 = vpop.f32.mrf.mxu2 }
 0x64b   : > { %v3164_v19 = vpop.f32.mrf.mxu2 }
 0x653   : > { %v3166_v55 = vpop.f32.mrf.mxu2  ;;  %v3168_v60 = vpop.f32.mrf.mxu3 }
 0x65b   : > { %v3170_v32 = vpop.f32.mrf.mxu2  ;;  %v3172_v46 = vpop.f32.mrf.mxu3 }
 0x663   : > { %v3174_v39 = vpop.f32.mrf.mxu2  ;;  %v3176_v40 = vpop.f32.mrf.mxu3 }
 0x66b   : > { %v3178_v4 = vpop.f32.mrf.mxu2  ;;  %v3180_v31 = vpop.f32.mrf.mxu3 }
 0x673   : > { %v3182_v62 = vpop.f32.mrf.mxu2  ;;  %v3184_v3 = vpop.f32.mrf.mxu3 }
 0x67b   : > { %v3186_v33 = vpop.f32.mrf.mxu2  ;;  %v3188_v15 = vpop.f32.mrf.mxu3 }
 0x683   : > { %v3190_v50 = vpop.f32.mrf.mxu2  ;;  %v3192_v58 = vpop.f32.mrf.mxu3 }
 0x68b   : > { %v3194_v26 = vpop.f32.mrf.mxu2  ;;  %v3196_v61 = vpop.f32.mrf.mxu3 }
 0x693   : > { %v3198_v47 = vpop.f32.mrf.mxu2  ;;  %v3200_v11 = vpop.f32.mrf.mxu3 }
 0x69b   : > { %v3202_v63 = vpop.f32.mrf.mxu2  ;;  %v3204_v43 = vpop.f32.mrf.mxu3 }
 0x6a3   : > { %v3206_v14 = vpop.f32.mrf.mxu2  ;;  %v3208_v52 = vpop.f32.mrf.mxu3 }
 0x6ab   : > { %v3210_v35 = vpop.f32.mrf.mxu2  ;;  %v3212_v28 = vpop.f32.mrf.mxu3 }
 0x6b3   : > { %v3214_v57 = vpop.f32.mrf.mxu2  ;;  %v3216_v10 = vpop.f32.mrf.mxu3 }
 0x6bb   : > { %v3218_v59 = vpop.f32.mrf.mxu2  ;;  %v3220_v6 = vpop.f32.mrf.mxu3 }
 0x6bf   : > { %1629 = sbr.rel (%p1889_p7) target bundleno = 1767 (0x6e7), region = 44 }
 0x6c3   : > { %v3222_v23 = vpop.f32.mrf.mxu2 }
 0x6c4   : > { %v2389_v12 = vld [vmem:[%s3408_s3] ss:$0 sm:$0xff] }
 0x6c5   : > { %v1634_v48 = vadd.f32 %v2389_v12, %v3160_v30  ;;  %v1635_v53 = vadd.f32 %v2389_v12, %v3162_v2  ;;  %v1636_v25 = vadd.f32 %v2389_v12, %v3164_v19  ;;  %v1637_v13 = vadd.f32 %v2389_v12, %v3166_v55 }
 0x6c6   : > { %v1638_v56 = vadd.f32 %v2389_v12, %v3170_v32  ;;  %v1639_v22 = vadd.f32 %v2389_v12, %v3174_v39  ;;  %v1640_v9 = vadd.f32 %v2389_v12, %v3178_v4  ;;  %v1641_v1 = vadd.f32 %v2389_v12, %v3182_v62 }
 0x6c7   : > { %1666 = vst [vmem:[%s2509_s8] sm:$0xff] %v1634_v48  ;;  %v1642_v49 = vadd.f32 %v2389_v12, %v3186_v33  ;;  %v1643_v21 = vadd.f32 %v2389_v12, %v3190_v50  ;;  %v1644_v5 = vadd.f32 %v2389_v12, %v3194_v26  ;;  %v1645_v20 = vadd.f32 %v2389_v12, %v3198_v47 }
 0x6c8   : > { %1667 = vst [vmem:[%s2509_s8 + $0x8] sm:$0xff] %v1635_v53  ;;  %v1646_v41 = vadd.f32 %v2389_v12, %v3202_v63  ;;  %v1647_v7 = vadd.f32 %v2389_v12, %v3206_v14  ;;  %v1648_v24 = vadd.f32 %v2389_v12, %v3210_v35  ;;  %v1649_v16 = vadd.f32 %v2389_v12, %v3214_v57 }
 0x6c9   : > { %1668 = vst [vmem:[%s2509_s8 + $0x10] sm:$0xff] %v1636_v25  ;;  %v1650_v45 = vadd.f32 %v2389_v12, %v3218_v59  ;;  %v1651_v42 = vadd.f32 %v2389_v12, %v3222_v23  ;;  %v1652_v38 = vadd.f32 %v2389_v12, %v3168_v60  ;;  %v1653_v34 = vadd.f32 %v2389_v12, %v3172_v46 }
 0x6ca   : > { %1669 = vst [vmem:[%s2509_s8 + $0x18] sm:$0xff] %v1637_v13  ;;  %v1654_v36 = vadd.f32 %v2389_v12, %v3176_v40  ;;  %v1655_v54 = vadd.f32 %v2389_v12, %v3180_v31  ;;  %v1656_v0 = vadd.f32 %v2389_v12, %v3184_v3  ;;  %v1657_v44 = vadd.f32 %v2389_v12, %v3188_v15 }
 0x6cb   : > { %1670 = vst [vmem:[%s2509_s8 + $0x20] sm:$0xff] %v1638_v56  ;;  %v1658_v8 = vadd.f32 %v2389_v12, %v3192_v58  ;;  %v1659_v17 = vadd.f32 %v2389_v12, %v3196_v61  ;;  %v1660_v51 = vadd.f32 %v2389_v12, %v3200_v11  ;;  %v1661_v18 = vadd.f32 %v2389_v12, %v3204_v43 }
 0x6cc   : > { %1671 = vst [vmem:[%s2509_s8 + $0x28] sm:$0xff] %v1639_v22  ;;  %v1662_v27 = vadd.f32 %v2389_v12, %v3208_v52  ;;  %v1663_v29 = vadd.f32 %v2389_v12, %v3212_v28  ;;  %v1664_v37 = vadd.f32 %v2389_v12, %v3216_v10  ;;  %v1665_v48 = vadd.f32 %v2389_v12, %v3220_v6 }
 0x6cd   : > { %1672 = vst [vmem:[%s2509_s8 + $0x30] sm:$0xff] %v1640_v9 }
 0x6ce   : > { %1673 = vst [vmem:[%s2509_s8 + $0x38] sm:$0xff] %v1641_v1 }
 0x6cf   : > { %1674 = vst [vmem:[%s2509_s8 + $0x40] sm:$0xff] %v1642_v49 }
 0x6d0   : > { %1675 = vst [vmem:[%s2509_s8 + $0x48] sm:$0xff] %v1643_v21 }
 0x6d1   : > { %1676 = vst [vmem:[%s2509_s8 + $0x50] sm:$0xff] %v1644_v5 }
 0x6d2   : > { %1677 = vst [vmem:[%s2509_s8 + $0x58] sm:$0xff] %v1645_v20 }
 0x6d3   : > { %1678 = vst [vmem:[%s2509_s8 + $0x60] sm:$0xff] %v1646_v41 }
 0x6d4   : > { %1679 = vst [vmem:[%s2509_s8 + $0x68] sm:$0xff] %v1647_v7 }
 0x6d5   : > { %1680 = vst [vmem:[%s2509_s8 + $0x70] sm:$0xff] %v1648_v24 }
 0x6d6   : > { %1681 = vst [vmem:[%s2509_s8 + $0x78] sm:$0xff] %v1649_v16 }
 0x6d7   : > { %1682 = vst [vmem:[%s2509_s8 + $0x80] sm:$0xff] %v1650_v45 }
 0x6d8   : > { %1683 = vst [vmem:[%s2509_s8 + $0x88] sm:$0xff] %v1651_v42 }
 0x6d9   : > { %1684 = vst [vmem:[%s2509_s8 + $0x90] sm:$0xff] %v1652_v38 }
 0x6da   : > { %1685 = vst [vmem:[%s2509_s8 + $0x98] sm:$0xff] %v1653_v34 }
 0x6db   : > { %1686 = vst [vmem:[%s2509_s8 + $0xa0] sm:$0xff] %v1654_v36 }
 0x6dc   : > { %1687 = vst [vmem:[%s2509_s8 + $0xa8] sm:$0xff] %v1655_v54 }
 0x6dd   : > { %1688 = vst [vmem:[%s2509_s8 + $0xb0] sm:$0xff] %v1656_v0 }
 0x6de   : > { %1689 = vst [vmem:[%s2509_s8 + $0xb8] sm:$0xff] %v1657_v44 }
 0x6df   : > { %1690 = vst [vmem:[%s2509_s8 + $0xc0] sm:$0xff] %v1658_v8 }
 0x6e0   : > { %1691 = vst [vmem:[%s2509_s8 + $0xc8] sm:$0xff] %v1659_v17 }
 0x6e1   : > { %1692 = vst [vmem:[%s2509_s8 + $0xd0] sm:$0xff] %v1660_v51 }
 0x6e2   : > { %1693 = vst [vmem:[%s2509_s8 + $0xd8] sm:$0xff] %v1661_v18 }
 0x6e3   : > { %1694 = vst [vmem:[%s2509_s8 + $0xe0] sm:$0xff] %v1662_v27 }
 0x6e4   : > { %1695 = vst [vmem:[%s2509_s8 + $0xe8] sm:$0xff] %v1663_v29 }
 0x6e5   : > { %1696 = vst [vmem:[%s2509_s8 + $0xf0] sm:$0xff] %v1664_v37 }
 0x6e6   : > { %1697 = vst [vmem:[%s2509_s8 + $0xf8] sm:$0xff] %v1665_v48 }
 0x6e7 PF: > { %p2118_p8 = scmp.eq.s32.totalorder %s2412_s15, 0 }
 0x6e9   : > { %1701 = sbr.rel (%p2118_p8) target bundleno = 1809 (0x711), region = 48 }
 0x6ee   : > { %v1702_v53 = vld [vmem:[%s2509_s8] sm:$0xff]  ;;  %v1703_v12 = vld [vmem:[%s2509_s8 + $0x8] sm:$0xff]  ;;  %v1704_v25 = vld [vmem:[%s2509_s8 + $0x10] sm:$0xff] }
 0x6ef   : > { %v1734_v13 = vadd.f32 %v1702_v53, %v3160_v30  ;;  %v1735_v56 = vadd.f32 %v1703_v12, %v3162_v2  ;;  %v1736_v22 = vadd.f32 %v1704_v25, %v3164_v19  ;;  %v1705_v9 = vld [vmem:[%s2509_s8 + $0x18] sm:$0xff]  ;;  %v1706_v1 = vld [vmem:[%s2509_s8 + $0x20] sm:$0xff]  ;;  %v1707_v49 = vld [vmem:[%s2509_s8 + $0x28] sm:$0xff] }
 0x6f0   : > { %v1737_v21 = vadd.f32 %v1705_v9, %v3166_v55  ;;  %v1708_v5 = vld [vmem:[%s2509_s8 + $0x30] sm:$0xff]  ;;  %v1738_v20 = vadd.f32 %v1706_v1, %v3170_v32  ;;  %v1709_v30 = vld [vmem:[%s2509_s8 + $0x38] sm:$0xff]  ;;  %v1739_v2 = vadd.f32 %v1707_v49, %v3174_v39  ;;  %v1710_v19 = vld [vmem:[%s2509_s8 + $0x40] sm:$0xff] }
 0x6f1   : > { %1766 = vst [vmem:[%s2509_s8] sm:$0xff] %v1734_v13  ;;  %v1740_v41 = vadd.f32 %v1708_v5, %v3178_v4  ;;  %v1711_v55 = vld [vmem:[%s2509_s8 + $0x48] sm:$0xff]  ;;  %v1741_v7 = vadd.f32 %v1709_v30, %v3182_v62  ;;  %v1712_v32 = vld [vmem:[%s2509_s8 + $0x50] sm:$0xff]  ;;  %v1742_v24 = vadd.f32 %v1710_v19, %v3186_v33  ;;  %v1713_v39 = vld [vmem:[%s2509_s8 + $0x58] sm:$0xff] }
 0x6f2   : > { %1767 = vst [vmem:[%s2509_s8 + $0x8] sm:$0xff] %v1735_v56  ;;  %v1743_v16 = vadd.f32 %v1711_v55, %v3190_v50  ;;  %v1714_v4 = vld [vmem:[%s2509_s8 + $0x60] sm:$0xff]  ;;  %v1744_v45 = vadd.f32 %v1712_v32, %v3194_v26  ;;  %v1715_v62 = vld [vmem:[%s2509_s8 + $0x68] sm:$0xff]  ;;  %v1745_v42 = vadd.f32 %v1713_v39, %v3198_v47  ;;  %v1716_v33 = vld [vmem:[%s2509_s8 + $0x70] sm:$0xff] }
 0x6f3   : > { %1768 = vst [vmem:[%s2509_s8 + $0x10] sm:$0xff] %v1736_v22  ;;  %v1746_v38 = vadd.f32 %v1714_v4, %v3202_v63  ;;  %v1717_v50 = vld [vmem:[%s2509_s8 + $0x78] sm:$0xff]  ;;  %v1747_v34 = vadd.f32 %v1715_v62, %v3206_v14  ;;  %v1718_v26 = vld [vmem:[%s2509_s8 + $0x80] sm:$0xff]  ;;  %v1748_v36 = vadd.f32 %v1716_v33, %v3210_v35  ;;  %v1719_v47 = vld [vmem:[%s2509_s8 + $0x88] sm:$0xff] }
 0x6f4   : > { %1769 = vst [vmem:[%s2509_s8 + $0x18] sm:$0xff] %v1737_v21  ;;  %v1749_v54 = vadd.f32 %v1717_v50, %v3214_v57  ;;  %v1720_v63 = vld [vmem:[%s2509_s8 + $0x90] sm:$0xff]  ;;  %v1750_v0 = vadd.f32 %v1718_v26, %v3218_v59  ;;  %v1721_v14 = vld [vmem:[%s2509_s8 + $0x98] sm:$0xff]  ;;  %v1751_v44 = vadd.f32 %v1719_v47, %v3222_v23  ;;  %v1722_v35 = vld [vmem:[%s2509_s8 + $0xa0] sm:$0xff] }
 0x6f5   : > { %1770 = vst [vmem:[%s2509_s8 + $0x20] sm:$0xff] %v1738_v20  ;;  %v1752_v8 = vadd.f32 %v1720_v63, %v3168_v60  ;;  %v1723_v57 = vld [vmem:[%s2509_s8 + $0xa8] sm:$0xff]  ;;  %v1753_v17 = vadd.f32 %v1721_v14, %v3172_v46  ;;  %v1724_v59 = vld [vmem:[%s2509_s8 + $0xb0] sm:$0xff]  ;;  %v1754_v51 = vadd.f32 %v1722_v35, %v3176_v40  ;;  %v1725_v23 = vld [vmem:[%s2509_s8 + $0xb8] sm:$0xff] }
 0x6f6   : > { %1771 = vst [vmem:[%s2509_s8 + $0x28] sm:$0xff] %v1739_v2  ;;  %v1755_v18 = vadd.f32 %v1723_v57, %v3180_v31  ;;  %v1726_v60 = vld [vmem:[%s2509_s8 + $0xc0] sm:$0xff]  ;;  %v1756_v27 = vadd.f32 %v1724_v59, %v3184_v3  ;;  %v1727_v46 = vld [vmem:[%s2509_s8 + $0xc8] sm:$0xff]  ;;  %v1757_v29 = vadd.f32 %v1725_v23, %v3188_v15  ;;  %v1728_v40 = vld [vmem:[%s2509_s8 + $0xd0] sm:$0xff] }
 0x6f7   : > { %1772 = vst [vmem:[%s2509_s8 + $0x30] sm:$0xff] %v1740_v41  ;;  %v1758_v37 = vadd.f32 %v1726_v60, %v3192_v58  ;;  %v1729_v31 = vld [vmem:[%s2509_s8 + $0xd8] sm:$0xff]  ;;  %v1759_v48 = vadd.f32 %v1727_v46, %v3196_v61  ;;  %v1730_v53 = vld [vmem:[%s2509_s8 + $0xe0] sm:$0xff]  ;;  %v1760_v3 = vadd.f32 %v1728_v40, %v3200_v11  ;;  %v1731_v15 = vld [vmem:[%s2509_s8 + $0xe8] sm:$0xff] }
 0x6f8   : > { %1773 = vst [vmem:[%s2509_s8 + $0x38] sm:$0xff] %v1741_v7  ;;  %v1761_v12 = vadd.f32 %v1729_v31, %v3204_v43  ;;  %v1732_v25 = vld [vmem:[%s2509_s8 + $0xf0] sm:$0xff]  ;;  %v1762_v58 = vadd.f32 %v1730_v53, %v3208_v52  ;;  %v1733_v13 = vld [vmem:[%s2509_s8 + $0xf8] sm:$0xff]  ;;  %v1763_v61 = vadd.f32 %v1731_v15, %v3212_v28 }
 0x6f9   : > { %1774 = vst [vmem:[%s2509_s8 + $0x40] sm:$0xff] %v1742_v24  ;;  %v1764_v56 = vadd.f32 %v1732_v25, %v3216_v10  ;;  %v1765_v11 = vadd.f32 %v1733_v13, %v3220_v6 }
 0x6fa   : > { %1775 = vst [vmem:[%s2509_s8 + $0x48] sm:$0xff] %v1743_v16 }
 0x6fb   : > { %1776 = vst [vmem:[%s2509_s8 + $0x50] sm:$0xff] %v1744_v45 }
 0x6fc   : > { %1777 = vst [vmem:[%s2509_s8 + $0x58] sm:$0xff] %v1745_v42 }
 0x6fd   : > { %1778 = vst [vmem:[%s2509_s8 + $0x60] sm:$0xff] %v1746_v38 }
 0x6fe   : > { %1779 = vst [vmem:[%s2509_s8 + $0x68] sm:$0xff] %v1747_v34 }
 0x6ff   : > { %1780 = vst [vmem:[%s2509_s8 + $0x70] sm:$0xff] %v1748_v36 }
 0x700   : > { %1781 = vst [vmem:[%s2509_s8 + $0x78] sm:$0xff] %v1749_v54 }
 0x701   : > { %1782 = vst [vmem:[%s2509_s8 + $0x80] sm:$0xff] %v1750_v0 }
 0x702   : > { %1783 = vst [vmem:[%s2509_s8 + $0x88] sm:$0xff] %v1751_v44 }
 0x703   : > { %1784 = vst [vmem:[%s2509_s8 + $0x90] sm:$0xff] %v1752_v8 }
 0x704   : > { %1785 = vst [vmem:[%s2509_s8 + $0x98] sm:$0xff] %v1753_v17 }
 0x705   : > { %1786 = vst [vmem:[%s2509_s8 + $0xa0] sm:$0xff] %v1754_v51 }
 0x706   : > { %1787 = vst [vmem:[%s2509_s8 + $0xa8] sm:$0xff] %v1755_v18 }
 0x707   : > { %1788 = vst [vmem:[%s2509_s8 + $0xb0] sm:$0xff] %v1756_v27 }
 0x708   : > { %1789 = vst [vmem:[%s2509_s8 + $0xb8] sm:$0xff] %v1757_v29 }
 0x709   : > { %1790 = vst [vmem:[%s2509_s8 + $0xc0] sm:$0xff] %v1758_v37 }
 0x70a   : > { %1791 = vst [vmem:[%s2509_s8 + $0xc8] sm:$0xff] %v1759_v48 }
 0x70b   : > { %1792 = vst [vmem:[%s2509_s8 + $0xd0] sm:$0xff] %v1760_v3 }
 0x70c   : > { %1793 = vst [vmem:[%s2509_s8 + $0xd8] sm:$0xff] %v1761_v12 }
 0x70d   : > { %1794 = vst [vmem:[%s2509_s8 + $0xe0] sm:$0xff] %v1762_v58 }
 0x70e   : > { %1795 = vst [vmem:[%s2509_s8 + $0xe8] sm:$0xff] %v1763_v61 }
 0x70f   : > { %1796 = vst [vmem:[%s2509_s8 + $0xf0] sm:$0xff] %v1764_v56 }
 0x710   : > { %1797 = vst [vmem:[%s2509_s8 + $0xf8] sm:$0xff] %v1765_v11 }
 0x711 PF: > { %s14_s19 = sadd.s32 1, %s2428_s19   ;;  %s3475_s15 = smov %s2420_s17 }
 0x712   : > { %p11_p9 = scmp.ge.s32.totalorder %s14_s19, 6   ;;  %s3476_s16 = smov %s2424_s18 }
 0x713   : > { %s3477_s17 = smov %s3480_s20  ;;  %s3478_s18 = smov %s3484_s21 }
 0x714   :  { %13 = sbr.rel (!%p11_p9) target bundleno = 3 (0x3), region = 83 }

</bundles_post_ra>
